<compile_context>
chip_gen: v5e
topology: v5e:2x2
jax: 0.10.0
libtpu: 0.0.40
codegen_flags: <defaults>
</compile_context>

<pallas_src>
import jax
import jax.numpy as jnp
import numpy as np
from jax.experimental import pallas as pl
from jax.experimental.pallas import tpu as pltpu

# ---------------------------------------------------------------------------
# Config (SentenceRegression(vec_num, input_size, output_size, layer_neurons)
# defaults, scaled down; batch sized so the grid amortizes launch/DMA cost).
# ---------------------------------------------------------------------------
VEC_NUM = 3
INPUT_SIZE = 32
OUTPUT_SIZE = 2                  # tanh/sigmoid epilogue assumes exactly 2 cols
LAYER_NEURONS = [64, 48, 32]     # last entry is the regression-head hidden size
BATCH = 256                      # multiple of TILE_B
TILE_B = 128                     # batch tile per grid step (fills MXU rows on v5e)
BN_EPS = 1e-5
LEAKY_SLOPE = 0.01               # nn.LeakyReLU() default negative_slope

assert OUTPUT_SIZE == 2, "epilogue hard-codes [tanh(col0), sigmoid(col1)]"
assert BATCH % TILE_B == 0

# ---------------------------------------------------------------------------
# Packed-parameter layout (computed at import time, all static).
#   All hidden activations are padded to PACK_WIDTH lanes (128-multiple); the
#   packed weight slab stacks [W1; W2; Wr1; Wr2] row-wise, the bias slab holds
#   one row per layer.  Padded rows/cols are zero => identical math.
# ---------------------------------------------------------------------------
def _round_up(n, m):
    return ((n + m - 1) // m) * m

GI = VEC_NUM * INPUT_SIZE                                     # 96 (input width)
PACK_WIDTH = _round_up(
    max([VEC_NUM * n for n in LAYER_NEURONS[:-1]]
        + [LAYER_NEURONS[-1], OUTPUT_SIZE]), 128)             # 256

_w_slices = []
_r = 0
_in_rows = GI
for _ in range(len(LAYER_NEURONS[:-1]) + 2):   # branch hidden layers + reg head (2 linears)
    _w_slices.append((_r, _r + _in_rows))
    _r += _in_rows
    _in_rows = PACK_WIDTH
W_SLICES = tuple(_w_slices)                    # ((0,96),(96,352),(352,608),(608,864))
PACK_ROWS = _r                                 # 864
N_LAYERS = len(W_SLICES)                       # 4
assert all(s % 8 == 0 for s, _ in W_SLICES) and PACK_ROWS % 8 == 0


# ---------------------------------------------------------------------------
# Fused Pallas kernel: whole forward pass for one batch tile.
#   x_ref : (TILE_B, GI)        activations tile
#   w_ref : (PACK_ROWS, 256)    packed, BN-folded, block-diagonal weights (resident)
#   b_ref : (N_LAYERS, 256)     packed, BN-folded biases (resident)
#   o_ref : (TILE_B, 2)         output tile
# ---------------------------------------------------------------------------
def _forward_kernel(x_ref, w_ref, b_ref, o_ref):
    h = x_ref[...]
    for li, (r0, r1) in enumerate(W_SLICES):               # unrolled at trace time
        h = jnp.dot(h, w_ref[r0:r1, :],
                    preferred_element_type=jnp.float32) + b_ref[li:li + 1, :]
        if li < N_LAYERS - 1:                               # LeakyReLU on all but last
            h = jnp.maximum(h, LEAKY_SLOPE * h)
    y = h[:, :OUTPUT_SIZE]                                  # (TILE_B, 2)
    # torch.stack([tanh(y[:,0]), sigmoid(y[:,1])], dim=1) * 100.0
    # Single EUP pass: sigmoid(v) = 0.5 * (tanh(0.5*v) + 1).
    col = jax.lax.broadcasted_iota(jnp.int32, y.shape, 1)
    t = jnp.tanh(jnp.where(col == 0, y, 0.5 * y))
    o_ref[...] = jnp.where(col == 0, t, 0.5 * (t + 1.0)) * 100.0


def forward_pallas(w_pack, b_pack, x):
    """x: (B, VEC_NUM*INPUT_SIZE) -> (B, OUTPUT_SIZE); batch-tiled grid,
    weights/biases VMEM-resident across grid steps."""
    B = x.shape[0]
    assert B % TILE_B == 0
    grid = (B // TILE_B,)
    return pl.pallas_call(
        _forward_kernel,
        out_shape=jax.ShapeDtypeStruct((B, OUTPUT_SIZE), jnp.float32),
        grid_spec=pltpu.PrefetchScalarGridSpec(
            num_scalar_prefetch=0,
            grid=grid,
            in_specs=[
                pl.BlockSpec((TILE_B, GI), lambda i: (i, 0)),              # x tile
                pl.BlockSpec((PACK_ROWS, PACK_WIDTH), lambda i: (0, 0)),   # weights, resident
                pl.BlockSpec((N_LAYERS, PACK_WIDTH), lambda i: (0, 0)),    # biases, resident
            ],
            out_specs=pl.BlockSpec((TILE_B, OUTPUT_SIZE), lambda i: (i, 0)),
        ),
        compiler_params=pltpu.CompilerParams(
            dimension_semantics=("parallel",)),   # shards batch tiles across v7x's 2 TCs
    )(x, w_pack, b_pack)


sentence_regression_forward = jax.jit(forward_pallas)


# ---------------------------------------------------------------------------
# Parameter init (PyTorch-style Linear init; eval-mode BN as scale/shift).
# Branches get independent parameters (general case; a fresh torch module's
# deepcopy'd branches would simply have identical values).
# ---------------------------------------------------------------------------
def _init_linear(key, fan_in, fan_out):
    kw, kb = jax.random.split(key)
    bound = 1.0 / np.sqrt(fan_in)
    w = jax.random.uniform(kw, (fan_in, fan_out), jnp.float32, -bound, bound)
    b = jax.random.uniform(kb, (fan_out,), jnp.float32, -bound, bound)
    return w, b


def _init_bn(key, num_features):
    # Arbitrary (nontrivial) eval-mode BN stats -> per-feature affine.
    k1, k2, k3, k4 = jax.random.split(key, 4)
    gamma = 1.0 + 0.1 * jax.random.normal(k1, (num_features,), jnp.float32)
    beta = 0.1 * jax.random.normal(k2, (num_features,), jnp.float32)
    mean = 0.1 * jax.random.normal(k3, (num_features,), jnp.float32)
    var = jax.random.uniform(k4, (num_features,), jnp.float32, 0.5, 1.5)
    scale = gamma / jnp.sqrt(var + BN_EPS)
    shift = beta - mean * scale
    return scale, shift


def init_raw_params(key):
    # Key generator avoids the fixed-count/StopIteration bug.
    def _keygen(k):
        while True:
            k, sub = jax.random.split(k)
            yield sub
    kg = _keygen(key)

    hidden = LAYER_NEURONS[:-1]
    last = LAYER_NEURONS[-1]
    raw = {"branch_layers": []}
    prev = INPUT_SIZE
    for n in hidden:
        ws, bs, scales, shifts = [], [], [], []
        for _ in range(VEC_NUM):
            w, b = _init_linear(next(kg), prev, n)
            s, t = _init_bn(next(kg), n)
            ws.append(w); bs.append(b); scales.append(s); shifts.append(t)
        raw["branch_layers"].append(dict(
            w=jnp.stack(ws), b=jnp.stack(bs),
            scale=jnp.stack(scales), shift=jnp.stack(shifts)))
        prev = n

    w, b = _init_linear(next(kg), prev * VEC_NUM, last)
    s, t = _init_bn(next(kg), last)
    raw["reg1"] = dict(w=w, b=b, scale=s, shift=t)

    w, b = _init_linear(next(kg), last, OUTPUT_SIZE)
    raw["reg2"] = dict(w=w, b=b)
    return raw


def fold_params(raw):
    """Fold eval-mode BN into the Linear weights, merge the vec_num branches
    block-diagonally, zero-pad every hidden width to PACK_WIDTH lanes, and pack
    all weights into one (PACK_ROWS, PACK_WIDTH) slab + biases into one
    (N_LAYERS, PACK_WIDTH) slab.  Padded rows/cols are zero => exact math."""
    w_pack = np.zeros((PACK_ROWS, PACK_WIDTH), np.float32)
    b_pack = np.zeros((N_LAYERS, PACK_WIDTH), np.float32)

    # Branch hidden layers: fold BN, place block-diagonally.
    prev = INPUT_SIZE
    for li, layer in enumerate(raw["branch_layers"]):
        w = np.asarray(layer["w"]) * np.asarray(layer["scale"])[:, None, :]   # (G, prev, n)
        b = (np.asarray(layer["b"]) * np.asarray(layer["scale"])
             + np.asarray(layer["shift"]))                                    # (G, n)
        n = w.shape[-1]
        r0 = W_SLICES[li][0]
        for g in range(VEC_NUM):
            w_pack[r0 + g * prev:r0 + (g + 1) * prev, g * n:(g + 1) * n] = w[g]
        b_pack[li, :VEC_NUM * n] = b.reshape(-1)
        prev = n

    # Regression head layer 1 (Linear + folded BN).
    li = len(raw["branch_layers"])
    r1 = raw["reg1"]
    w = np.asarray(r1["w"]) * np.asarray(r1["scale"])[None, :]                # (G*prev, last)
    b = np.asarray(r1["b"]) * np.asarray(r1["scale"]) + np.asarray(r1["shift"])
    r0 = W_SLICES[li][0]
    w_pack[r0:r0 + w.shape[0], :w.shape[1]] = w
    b_pack[li, :b.shape[0]] = b

    # Regression head layer 2 (plain Linear).
    r2 = raw["reg2"]
    w = np.asarray(r2["w"])                                                   # (last, 2)
    b = np.asarray(r2["b"])
    r0 = W_SLICES[-1][0]
    w_pack[r0:r0 + w.shape[0], :w.shape[1]] = w
    b_pack[-1, :b.shape[0]] = b

    return jnp.asarray(w_pack), jnp.asarray(b_pack)


# ---------------------------------------------------------------------------
# Pure-JAX reference (un-fused, un-folded, un-padded; same eval-mode semantics).
# ---------------------------------------------------------------------------
def reference_forward(raw, x):
    feats = []
    for g in range(VEC_NUM):
        h = x[:, g * INPUT_SIZE:(g + 1) * INPUT_SIZE]
        for layer in raw["branch_layers"]:
            y = h @ layer["w"][g] + layer["b"][g]
            y = y * layer["scale"][g] + layer["shift"][g]
            h = jnp.where(y >= 0, y, LEAKY_SLOPE * y)
        feats.append(h)
    # torch.stack(dim=0).permute(1,0,2).reshape(B,-1) == concat along features
    feat = jnp.concatenate(feats, axis=1)
    y = feat @ raw["reg1"]["w"] + raw["reg1"]["b"]
    y = y * raw["reg1"]["scale"] + raw["reg1"]["shift"]
    y = jnp.where(y >= 0, y, LEAKY_SLOPE * y)
    y = y @ raw["reg2"]["w"] + raw["reg2"]["b"]
    return jnp.stack([jnp.tanh(y[:, 0]), jax.nn.sigmoid(y[:, 1])], axis=1) * 100.0


if __name__ == "__main__":
    key = jax.random.PRNGKey(0)
    pkey, xkey = jax.random.split(key)
    raw_params = init_raw_params(pkey)
    w_pack, b_pack = fold_params(raw_params)     # done once, outside the kernel
    x = jax.random.normal(xkey, (BATCH, VEC_NUM * INPUT_SIZE), jnp.float32)

    out = sentence_regression_forward(w_pack, b_pack, x)
    out = jax.block_until_ready(out)
    assert out.shape == (BATCH, OUTPUT_SIZE)

    ref = reference_forward(raw_params, x)
    np.testing.assert_allclose(np.asarray(out), np.asarray(ref),
                               rtol=1e-3, atol=1e-2)
    print("KERNEL_OK")
</pallas_src>

<mosaic_0001>
module attributes {stable_mosaic.version = 11 : i64} {
  func.func @_forward_kernel(%arg0: i32, %arg1: memref<128x96xf32, #tpu.memory_space<vmem>>, %arg2: memref<864x256xf32, #tpu.memory_space<vmem>>, %arg3: memref<4x256xf32, #tpu.memory_space<vmem>>, %arg4: memref<128x2xf32, #tpu.memory_space<vmem>>) attributes {dimension_semantics = [#tpu.dimension_semantics<parallel>], iteration_bounds = array<i64: 2>, scalar_prefetch = 0 : i64, scratch_operands = 0 : i64, tpu.core_type = #tpu.core_type<tc>, window_params = [{transform_indices = @transform_0, window_bounds = array<i64: 128, 96>}, {pipeline_mode = #tpu.pipeline_mode<synchronous>, transform_indices = @transform_1, window_bounds = array<i64: 864, 256>}, {pipeline_mode = #tpu.pipeline_mode<synchronous>, transform_indices = @transform_2, window_bounds = array<i64: 4, 256>}, {transform_indices = @transform_3, window_bounds = array<i64: 128, 2>}]} {
    %c0 = arith.constant 0 : index
    %c0_0 = arith.constant 0 : index
    %0 = vector.load %arg1[%c0, %c0_0] : memref<128x96xf32, #tpu.memory_space<vmem>>, vector<128x96xf32>
    %c0_1 = arith.constant 0 : index
    %c0_2 = arith.constant 0 : index
    %1 = vector.load %arg2[%c0_1, %c0_2] : memref<864x256xf32, #tpu.memory_space<vmem>>, vector<96x256xf32>
    %cst = arith.constant dense<0.000000e+00> : vector<128x256xf32>
    %2 = tpu.matmul %0, %1, %cst {dimension_numbers = #tpu.dot_dimension_numbers<[1], [0], [0], [1], [0, 0, 1, 1], [], []>} : vector<128x96xf32>, vector<96x256xf32>, vector<128x256xf32> -> vector<128x256xf32>
    %c0_3 = arith.constant 0 : index
    %c0_4 = arith.constant 0 : index
    %3 = vector.load %arg3[%c0_3, %c0_4] : memref<4x256xf32, #tpu.memory_space<vmem>>, vector<1x256xf32>
    %4 = vector.broadcast %3 : vector<1x256xf32> to vector<128x256xf32>
    %5 = arith.addf %2, %4 : vector<128x256xf32>
    %cst_5 = arith.constant 0.00999999977 : f32
    %6 = vector.broadcast %cst_5 : f32 to vector<128x256xf32>
    %7 = arith.mulf %6, %5 : vector<128x256xf32>
    %8 = arith.maximumf %5, %7 : vector<128x256xf32>
    %c96 = arith.constant 96 : index
    %c0_6 = arith.constant 0 : index
    %9 = vector.load %arg2[%c96, %c0_6] : memref<864x256xf32, #tpu.memory_space<vmem>>, vector<256x256xf32>
    %cst_7 = arith.constant dense<0.000000e+00> : vector<128x256xf32>
    %10 = tpu.matmul %8, %9, %cst_7 {dimension_numbers = #tpu.dot_dimension_numbers<[1], [0], [0], [1], [0, 0, 1, 1], [], []>} : vector<128x256xf32>, vector<256x256xf32>, vector<128x256xf32> -> vector<128x256xf32>
    %c1 = arith.constant 1 : index
    %c0_8 = arith.constant 0 : index
    %11 = vector.load %arg3[%c1, %c0_8] : memref<4x256xf32, #tpu.memory_space<vmem>>, vector<1x256xf32>
    %12 = vector.broadcast %11 : vector<1x256xf32> to vector<128x256xf32>
    %13 = arith.addf %10, %12 : vector<128x256xf32>
    %cst_9 = arith.constant 0.00999999977 : f32
    %14 = vector.broadcast %cst_9 : f32 to vector<128x256xf32>
    %15 = arith.mulf %14, %13 : vector<128x256xf32>
    %16 = arith.maximumf %13, %15 : vector<128x256xf32>
    %c352 = arith.constant 352 : index
    %c0_10 = arith.constant 0 : index
    %17 = vector.load %arg2[%c352, %c0_10] : memref<864x256xf32, #tpu.memory_space<vmem>>, vector<256x256xf32>
    %cst_11 = arith.constant dense<0.000000e+00> : vector<128x256xf32>
    %18 = tpu.matmul %16, %17, %cst_11 {dimension_numbers = #tpu.dot_dimension_numbers<[1], [0], [0], [1], [0, 0, 1, 1], [], []>} : vector<128x256xf32>, vector<256x256xf32>, vector<128x256xf32> -> vector<128x256xf32>
    %c2 = arith.constant 2 : index
    %c0_12 = arith.constant 0 : index
    %19 = vector.load %arg3[%c2, %c0_12] : memref<4x256xf32, #tpu.memory_space<vmem>>, vector<1x256xf32>
    %20 = vector.broadcast %19 : vector<1x256xf32> to vector<128x256xf32>
    %21 = arith.addf %18, %20 : vector<128x256xf32>
    %cst_13 = arith.constant 0.00999999977 : f32
    %22 = vector.broadcast %cst_13 : f32 to vector<128x256xf32>
    %23 = arith.mulf %22, %21 : vector<128x256xf32>
    %24 = arith.maximumf %21, %23 : vector<128x256xf32>
    %c608 = arith.constant 608 : index
    %c0_14 = arith.constant 0 : index
    %25 = vector.load %arg2[%c608, %c0_14] : memref<864x256xf32, #tpu.memory_space<vmem>>, vector<256x256xf32>
    %cst_15 = arith.constant dense<0.000000e+00> : vector<128x256xf32>
    %26 = tpu.matmul %24, %25, %cst_15 {dimension_numbers = #tpu.dot_dimension_numbers<[1], [0], [0], [1], [0, 0, 1, 1], [], []>} : vector<128x256xf32>, vector<256x256xf32>, vector<128x256xf32> -> vector<128x256xf32>
    %c3 = arith.constant 3 : index
    %c0_16 = arith.constant 0 : index
    %27 = vector.load %arg3[%c3, %c0_16] : memref<4x256xf32, #tpu.memory_space<vmem>>, vector<1x256xf32>
    %28 = vector.broadcast %27 : vector<1x256xf32> to vector<128x256xf32>
    %29 = arith.addf %26, %28 : vector<128x256xf32>
    %30 = vector.extract_strided_slice %29 {offsets = [0, 0], sizes = [128, 2], strides = [1, 1]} : vector<128x256xf32> to vector<128x2xf32>
    %31 = tpu.iota {dimensions = array<i32: 1>} : vector<128x2xi32>
    %c0_i32 = arith.constant 0 : i32
    %32 = vector.broadcast %c0_i32 : i32 to vector<128x2xi32>
    %33 = arith.cmpi eq, %31, %32 : vector<128x2xi32>
    %cst_17 = arith.constant 5.000000e-01 : f32
    %34 = vector.broadcast %cst_17 : f32 to vector<128x2xf32>
    %35 = arith.mulf %34, %30 : vector<128x2xf32>
    %36 = arith.select %33, %30, %35 : vector<128x2xi1>, vector<128x2xf32>
    %37 = math.tanh %36 : vector<128x2xf32>
    %c0_i32_18 = arith.constant 0 : i32
    %38 = vector.broadcast %c0_i32_18 : i32 to vector<128x2xi32>
    %39 = arith.cmpi eq, %31, %38 : vector<128x2xi32>
    %cst_19 = arith.constant 1.000000e+00 : f32
    %40 = vector.broadcast %cst_19 : f32 to vector<128x2xf32>
    %41 = arith.addf %37, %40 : vector<128x2xf32>
    %cst_20 = arith.constant 5.000000e-01 : f32
    %42 = vector.broadcast %cst_20 : f32 to vector<128x2xf32>
    %43 = arith.mulf %42, %41 : vector<128x2xf32>
    %44 = arith.select %39, %37, %43 : vector<128x2xi1>, vector<128x2xf32>
    %cst_21 = arith.constant 1.000000e+02 : f32
    %45 = vector.broadcast %cst_21 : f32 to vector<128x2xf32>
    %46 = arith.mulf %44, %45 : vector<128x2xf32>
    %c0_22 = arith.constant 0 : index
    %c0_23 = arith.constant 0 : index
    %47 = vector.load %arg4[%c0_22, %c0_23] : memref<128x2xf32, #tpu.memory_space<vmem>>, vector<128x2xf32>
    tpu.vector_store %arg4[%c0_22, %c0_23], %46 {strides = array<i32>} : memref<128x2xf32, #tpu.memory_space<vmem>>, vector<128x2xf32>,
    return
  }
  func.func @transform_0(%arg0: i32) -> (i32, i32) {
    %c0_i32 = arith.constant 0 : i32
    %c0_i32_0 = arith.constant 0 : i32
    return %arg0, %c0_i32 : i32, i32
  }
  func.func @transform_1(%arg0: i32) -> (i32, i32) {
    %c0_i32 = arith.constant 0 : i32
    %c0_i32_0 = arith.constant 0 : i32
    %c0_i32_1 = arith.constant 0 : i32
    return %c0_i32, %c0_i32_0 : i32, i32
  }
  func.func @transform_2(%arg0: i32) -> (i32, i32) {
    %c0_i32 = arith.constant 0 : i32
    %c0_i32_0 = arith.constant 0 : i32
    %c0_i32_1 = arith.constant 0 : i32
    return %c0_i32, %c0_i32_0 : i32, i32
  }
  func.func @transform_3(%arg0: i32) -> (i32, i32) {
    %c0_i32 = arith.constant 0 : i32
    %c0_i32_0 = arith.constant 0 : i32
    return %arg0, %c0_i32 : i32, i32
  }
}

</mosaic_0001>

<bundles_post_ra>
// kernel: forward_pallas.1
= control target key start
LH: loop header
LB: loop body
LE: loop exit
PB: predicated region body
PF: predicated region fallthrough
CT: control target
= control target key end

     0   :  { %8 = vsyncpa [#allocation3], 0  ;;  %s1803_s12 = smov 0   ;;  %s2119_s0 = inlined_call_operand.vmem [shape: f32[256,96], index: 0, kind: input, shape index: {}]   ;;  %s2120_s1 = inlined_call_operand.hbm [shape: f32[864,256], index: 1, kind: input, shape index: {}]   ;;  %s2121_s2 = inlined_call_operand.vmem [shape: f32[4,256], index: 2, kind: input, shape index: {}]   ;;  %s2122_s3 = inlined_call_operand.vmem [shape: f32[256,2], index: 3, kind: output, shape index: {}]  }
   0x1 LB: > { %s124_s15 = sshll.u32 %s2120_s1, 4  ;;  %s1637_s16 = sadd.s32 4294967295, %s1778_s12   ;;  %s1778_s12 = sphi %s1803_s12, %s14_s12   ;;  %s125_s15 = int_to_ptr.hbm [resolvable:$true] %s124_s15 }
   0x2   : > { %p1639_p0 = scmp.ge.s32.totalorder %s1778_s12, 1  ;;  %p113_p1 = scmp.lt.s32.totalorder %s1778_s12, 3 }
   0x3   : > { %p1693_p2 = scmp.eq.s32.totalorder %s1637_s16, 0  ;;  %s1780_s17 = smov [#allocation2]  }
   0x4   : > { %p114_p3 = pnand %p1639_p0, %p113_p1  ;;  %s126_s18 = sshll.u32 %s1780_s17, 4  ;;  %s127_s18 = int_to_ptr.vmem [resolvable:$true] %s126_s18 }
   0x5   : > { %s1781_s19 = smov 256   ;;  %s1782_s20 = smov 16  }
   0x6   : > { %p1689_p4 = pneg %p114_p3  ;;  %154 = sbr.rel (%p114_p3) target bundleno = 722 (0x2d2), region = 32 }
   0x8   : > { %p1690_p5 = pnand %p1693_p2, %p1689_p4 }
   0xa   : > { %1692 = dma.hbm_to_vmem [thread:$0]  (!%p1690_p5), %s125_s15, 27648, %s127_s18, [#allocation3], %s1781_s19, %s1781_s19, %s1782_s20  }
   0xb   : > { %1773 = dma.done.wait (%p1693_p2), [#allocation3], 27648  }
   0xc   : > { %1775 = vsyncadd (%p1693_p2), [#allocation3], 4294939648  ;;  %v229_v0 = vld [vmem:[#allocation2 + $0xb0] sm:$0xff]  ;;  %v230_v1 = vld [vmem:[#allocation2 + $0xb8] sm:$0xff]  ;;  %s1644_s21 = sshll.u32 %s1637_s16, 4  ;;  %vm237_vm0 = vcmask 785408  }
   0xd   : > { %v227_v2 = vld [vmem:[#allocation2 + $0xa0] sm:$0xff]  ;;  %290 = vmatpush.msra.mxu0 %v229_v0  ;;  %355 = vmatpush.msra.mxu1 %v230_v1  ;;  %v228_v3 = vld [vmem:[#allocation2 + $0xa8] sm:$0xff]  ;;  %v225_v4 = vld [vmem:[#allocation2 + $0x90] sm:$0xff]  ;;  %p180_p6 = scmp.lt.s32.totalorder %s1644_s21, 31  ;;  %vm1552_vm2 = vcmask 15360  }
   0xe   : > { %v226_v5 = vld [vmem:[#allocation2 + $0x98] sm:$0xff]  ;;  %v223_v6 = vld [vmem:[#allocation2 + $0x80] sm:$0xff]  ;;  %v224_v7 = vld [vmem:[#allocation2 + $0x88] sm:$0xff] }
   0xf   : > { %291 = vmatpush.msra.mxu0 %v227_v2  ;;  %356 = vmatpush.msra.mxu1 %v228_v3  ;;  %v221_v8 = vld [vmem:[#allocation2 + $0x70] sm:$0xff]  ;;  %v222_v9 = vld [vmem:[#allocation2 + $0x78] sm:$0xff]  ;;  %v219_v10 = vld [vmem:[#allocation2 + $0x60] sm:$0xff]  ;;  %s2124_s21 = smov (!%p180_p6, %s1644_s21), 31 }
  0x10   : > { %v220_v11 = vld [vmem:[#allocation2 + $0x68] sm:$0xff]  ;;  %v217_v12 = vld [vmem:[#allocation2 + $0x50] sm:$0xff]  ;;  %v218_v13 = vld [vmem:[#allocation2 + $0x58] sm:$0xff]  ;;  %s1645_s22 = sshll.u32 %s2124_s21, 3 }
  0x11   : > { %292 = vmatpush.msra.mxu0 %v225_v4  ;;  %357 = vmatpush.msra.mxu1 %v226_v5  ;;  %v215_v14 = vld [vmem:[#allocation2 + $0x40] sm:$0xff]  ;;  %v216_v15 = vld [vmem:[#allocation2 + $0x48] sm:$0xff]  ;;  %v213_v16 = vld [vmem:[#allocation2 + $0x30] sm:$0xff]  ;;  %s1822_s25 = scalar_lea.vmem %s2119_s0, %s1645_s22  ;;  %s2009_s9 = scalar_lea.vmem %s2122_s3, %s1645_s22 }
  0x12   : > { %v214_v17 = vld [vmem:[#allocation2 + $0x38] sm:$0xff]  ;;  %v211_v18 = vld [vmem:[#allocation2 + $0x20] sm:$0xff]  ;;  %v212_v19 = vld [vmem:[#allocation2 + $0x28] sm:$0xff] }
  0x13   : > { %293 = vmatpush.msra.mxu0 %v223_v6  ;;  %358 = vmatpush.msra.mxu1 %v224_v7  ;;  %v209_v20 = vld [vmem:[#allocation2 + $0x10] sm:$0xff]  ;;  %v210_v21 = vld [vmem:[#allocation2 + $0x18] sm:$0xff]  ;;  %v207_v22 = vld [vmem:[#allocation2] sm:$0xff] }
  0x14   : > { %v208_v23 = vld [vmem:[#allocation2 + $0x8] sm:$0xff]  ;;  %v191_v24 = vld [vmem:[%s1822_s25] sm:$0xff]  ;;  %v511_v25 = vld [vmem:[#allocation2 + $0x1b8] sm:$0xff] }
  0x15   : > { %294 = vmatpush.msra.mxu0 %v221_v8  ;;  %359 = vmatpush.msra.mxu1 %v222_v9  ;;  %v543_v26 = vld [vmem:[#allocation2 + $0x2b8] sm:$0xff]  ;;  %v509_v27 = vld [vmem:[#allocation2 + $0x1a8] sm:$0xff]  ;;  %v193_v36 = vld [vmem:[%s1822_s25 + $0x10] sm:$0xff] }
  0x16   : > { %v541_v28 = vld [vmem:[#allocation2 + $0x2a8] sm:$0xff]  ;;  %v507_v29 = vld [vmem:[#allocation2 + $0x198] sm:$0xff]  ;;  %v195_v42 = vld [vmem:[%s1822_s25 + $0x20] sm:$0xff] }
  0x17   : > { %295 = vmatpush.msra.mxu0 %v219_v10  ;;  %360 = vmatpush.msra.mxu1 %v220_v11  ;;  %v539_v30 = vld [vmem:[#allocation2 + $0x298] sm:$0xff]  ;;  %v505_v31 = vld [vmem:[#allocation2 + $0x188] sm:$0xff]  ;;  %v197_v48 = vld [vmem:[%s1822_s25 + $0x30] sm:$0xff] }
  0x18   : > { %v537_v32 = vld [vmem:[#allocation2 + $0x288] sm:$0xff]  ;;  %v503_v34 = vld [vmem:[#allocation2 + $0x178] sm:$0xff]  ;;  %v199_v54 = vld [vmem:[%s1822_s25 + $0x40] sm:$0xff] }
  0x19   : > { %296 = vmatpush.msra.mxu0 %v217_v12  ;;  %361 = vmatpush.msra.mxu1 %v218_v13  ;;  %v192_v33 = vld [vmem:[%s1822_s25 + $0x8] sm:$0xff]  ;;  %v535_v35 = vld [vmem:[#allocation2 + $0x278] sm:$0xff]  ;;  %v510_v56 = vld [vmem:[#allocation2 + $0x1b0] sm:$0xff] }
  0x1a   : > { %v501_v37 = vld [vmem:[#allocation2 + $0x168] sm:$0xff]  ;;  %v194_v39 = vld [vmem:[%s1822_s25 + $0x18] sm:$0xff]  ;;  %v542_v57 = vld [vmem:[#allocation2 + $0x2b0] sm:$0xff]  ;;  %551 = vmatpush.msra.mxu2 %v510_v56 }
  0x1b   : > { %297 = vmatpush.msra.mxu0 %v215_v14  ;;  %362 = vmatpush.msra.mxu1 %v216_v15  ;;  %v533_v38 = vld [vmem:[#allocation2 + $0x268] sm:$0xff]  ;;  %v499_v40 = vld [vmem:[#allocation2 + $0x158] sm:$0xff]  ;;  %v508_v59 = vld [vmem:[#allocation2 + $0x1a0] sm:$0xff] }
  0x1c   : > { %v531_v41 = vld [vmem:[#allocation2 + $0x258] sm:$0xff]  ;;  %v497_v43 = vld [vmem:[#allocation2 + $0x148] sm:$0xff]  ;;  %v540_v60 = vld [vmem:[#allocation2 + $0x2a0] sm:$0xff]  ;;  %616 = vmatpush.msra.mxu3 %v542_v57  ;;  %552 = vmatpush.msra.mxu2 %v508_v59 }
  0x1d   : > { %298 = vmatpush.msra.mxu0 %v213_v16  ;;  %363 = vmatpush.msra.mxu1 %v214_v17  ;;  %v529_v44 = vld [vmem:[#allocation2 + $0x248] sm:$0xff]  ;;  %v495_v46 = vld [vmem:[#allocation2 + $0x138] sm:$0xff]  ;;  %v506_v62 = vld [vmem:[#allocation2 + $0x190] sm:$0xff] }
  0x1e   : > { %v196_v45 = vld [vmem:[%s1822_s25 + $0x28] sm:$0xff]  ;;  %v527_v47 = vld [vmem:[#allocation2 + $0x238] sm:$0xff]  ;;  %617 = vmatpush.msra.mxu3 %v540_v60  ;;  %v538_v63 = vld [vmem:[#allocation2 + $0x290] sm:$0xff]  ;;  %553 = vmatpush.msra.mxu2 %v506_v62 }
  0x1f   : > { %299 = vmatpush.msra.mxu0 %v211_v18  ;;  %364 = vmatpush.msra.mxu1 %v212_v19  ;;  %v493_v49 = vld [vmem:[#allocation2 + $0x128] sm:$0xff]  ;;  %v198_v51 = vld [vmem:[%s1822_s25 + $0x38] sm:$0xff]  ;;  %v504_v0 = vld [vmem:[#allocation2 + $0x180] sm:$0xff] }
  0x20   : > { %v525_v50 = vld [vmem:[#allocation2 + $0x228] sm:$0xff]  ;;  %v491_v52 = vld [vmem:[#allocation2 + $0x118] sm:$0xff]  ;;  %618 = vmatpush.msra.mxu3 %v538_v63  ;;  %v536_v1 = vld [vmem:[#allocation2 + $0x280] sm:$0xff]  ;;  %554 = vmatpush.msra.mxu2 %v504_v0 }
  0x21   : > { %300 = vmatpush.msra.mxu0 %v209_v20  ;;  %365 = vmatpush.msra.mxu1 %v210_v21  ;;  %v523_v53 = vld [vmem:[#allocation2 + $0x218] sm:$0xff]  ;;  %v489_v55 = vld [vmem:[#allocation2 + $0x108] sm:$0xff]  ;;  %v502_v3 = vld [vmem:[#allocation2 + $0x170] sm:$0xff] }
  0x22   : > { %v521_v58 = vld [vmem:[#allocation2 + $0x208] sm:$0xff]  ;;  %v487_v2 = vld [vmem:[#allocation2 + $0xf8] sm:$0xff]  ;;  %v534_v4 = vld [vmem:[#allocation2 + $0x270] sm:$0xff]  ;;  %619 = vmatpush.msra.mxu3 %v536_v1  ;;  %555 = vmatpush.msra.mxu2 %v502_v3 }
  0x23   : > { %301 = vmatpush.msra.mxu0 %v207_v22  ;;  %366 = vmatpush.msra.mxu1 %v208_v23  ;;  %v200_v61 = vld [vmem:[%s1822_s25 + $0x48] sm:$0xff]  ;;  %v519_v5 = vld [vmem:[#allocation2 + $0x1f8] sm:$0xff]  ;;  %v500_v6 = vld [vmem:[#allocation2 + $0x160] sm:$0xff] }
  0x24   : > { %1648 = vmatmul.msk.f32.vlgmr.msra.gmra.mxu0 %vm237_vm0, %v191_v24  ;;  %1664 = vmatmul.msk.f32.vlgmr.msra.gmra.mxu1 %vm237_vm0, %v191_v24  ;;  %v532_v7 = vld [vmem:[#allocation2 + $0x260] sm:$0xff]  ;;  %v201_v8 = vld [vmem:[%s1822_s25 + $0x50] sm:$0xff]  ;;  %v485_v13 = vld [vmem:[#allocation2 + $0xe8] sm:$0xff] }
  0x25   : > { %681 = vmatpush.msrb.mxu0 %v511_v25  ;;  %746 = vmatpush.msrb.mxu1 %v543_v26  ;;  %v498_v9 = vld [vmem:[#allocation2 + $0x150] sm:$0xff]  ;;  %v496_v11 = vld [vmem:[#allocation2 + $0x140] sm:$0xff]  ;;  %v517_v16 = vld [vmem:[#allocation2 + $0x1e8] sm:$0xff] }
  0x26   : > { %620 = vmatpush.msra.mxu3 %v534_v4  ;;  %556 = vmatpush.msra.mxu2 %v500_v6  ;;  %v530_v10 = vld [vmem:[#allocation2 + $0x250] sm:$0xff]  ;;  %v528_v12 = vld [vmem:[#allocation2 + $0x240] sm:$0xff]  ;;  %v202_v19 = vld [vmem:[%s1822_s25 + $0x58] sm:$0xff] }
  0x27   : > { %682 = vmatpush.msrb.mxu0 %v509_v27  ;;  %747 = vmatpush.msrb.mxu1 %v541_v28  ;;  %v494_v14 = vld [vmem:[#allocation2 + $0x130] sm:$0xff]  ;;  %v492_v17 = vld [vmem:[#allocation2 + $0x120] sm:$0xff]  ;;  %v483_v24 = vld [vmem:[#allocation2 + $0xd8] sm:$0xff] }
  0x28   : > { %621 = vmatpush.msra.mxu3 %v532_v7  ;;  %557 = vmatpush.msra.mxu2 %v498_v9  ;;  %v526_v15 = vld [vmem:[#allocation2 + $0x230] sm:$0xff]  ;;  %v524_v18 = vld [vmem:[#allocation2 + $0x220] sm:$0xff]  ;;  %v515_v28 = vld [vmem:[#allocation2 + $0x1d8] sm:$0xff] }
  0x29   : > { %683 = vmatpush.msrb.mxu0 %v507_v29  ;;  %748 = vmatpush.msrb.mxu1 %v539_v30  ;;  %v490_v20 = vld [vmem:[#allocation2 + $0x110] sm:$0xff]  ;;  %v488_v22 = vld [vmem:[#allocation2 + $0x100] sm:$0xff]  ;;  %v936_v56 = vld [vmem:[#allocation2 + $0x4a8] sm:$0xff] }
  0x2a   : > { %622 = vmatpush.msra.mxu3 %v530_v10  ;;  %558 = vmatpush.msra.mxu2 %v496_v11  ;;  %v522_v21 = vld [vmem:[#allocation2 + $0x210] sm:$0xff]  ;;  %v520_v23 = vld [vmem:[#allocation2 + $0x200] sm:$0xff]  ;;  %v934_v4 = vld [vmem:[#allocation2 + $0x498] sm:$0xff] }
  0x2b   : > { %684 = vmatpush.msrb.mxu0 %v505_v31  ;;  %749 = vmatpush.msrb.mxu1 %v537_v32  ;;  %v486_v25 = vld [vmem:[#allocation2 + $0xf0] sm:$0xff]  ;;  %v203_v27 = vld [vmem:[%s1822_s25 + $0x60] sm:$0xff] }
  0x2c   : > { %1649 = vmatmul.msk.f32.gmra.mxu0 %vm237_vm0, %v192_v33  ;;  %1665 = vmatmul.msk.f32.gmra.mxu1 %vm237_vm0, %v192_v33  ;;  %v518_v26 = vld [vmem:[#allocation2 + $0x1f0] sm:$0xff]  ;;  %v484_v29 = vld [vmem:[#allocation2 + $0xe0] sm:$0xff] }
  0x2d   : > { %685 = vmatpush.msrb.mxu0 %v503_v34  ;;  %750 = vmatpush.msrb.mxu1 %v535_v35  ;;  %v516_v30 = vld [vmem:[#allocation2 + $0x1e0] sm:$0xff]  ;;  %v482_v31 = vld [vmem:[#allocation2 + $0xd0] sm:$0xff]  ;;  %v481_v34 = vld [vmem:[#allocation2 + $0xc8] sm:$0xff] }
  0x2e   : > { %623 = vmatpush.msra.mxu3 %v528_v12  ;;  %559 = vmatpush.msra.mxu2 %v494_v14  ;;  %v514_v32 = vld [vmem:[#allocation2 + $0x1d0] sm:$0xff]  ;;  %v480_v33 = vld [vmem:[#allocation2 + $0xc0] sm:$0xff]  ;;  %v513_v35 = vld [vmem:[#allocation2 + $0x1c8] sm:$0xff] }
  0x2f   : > { %686 = vmatpush.msrb.mxu0 %v501_v37  ;;  %751 = vmatpush.msrb.mxu1 %v533_v38  ;;  %v204_v37 = vld [vmem:[%s1822_s25 + $0x68] sm:$0xff]  ;;  %v205_v38 = vld [vmem:[%s1822_s25 + $0x70] sm:$0xff]  ;;  %v899_v1 = vld [vmem:[#allocation2 + $0x380] sm:$0xff] }
  0x30   : > { %624 = vmatpush.msra.mxu3 %v526_v15  ;;  %560 = vmatpush.msra.mxu2 %v492_v17  ;;  %v931_v3 = vld [vmem:[#allocation2 + $0x480] sm:$0xff]  ;;  %v900_v14 = vld [vmem:[#allocation2 + $0x388] sm:$0xff]  ;;  %v929_v15 = vld [vmem:[#allocation2 + $0x470] sm:$0xff] }
  0x31   : > { %687 = vmatpush.msrb.mxu0 %v499_v40  ;;  %752 = vmatpush.msrb.mxu1 %v531_v41  ;;  %v937_v40 = vld [vmem:[#allocation2 + $0x4b0] sm:$0xff]  ;;  %v206_v41 = vld [vmem:[%s1822_s25 + $0x78] sm:$0xff] }
  0x32   : > { %625 = vmatpush.msra.mxu3 %v524_v18  ;;  %561 = vmatpush.msra.mxu2 %v490_v20 }
  0x33   : > { %688 = vmatpush.msrb.mxu0 %v497_v43  ;;  %753 = vmatpush.msrb.mxu1 %v529_v44  ;;  %v906_v43 = vld [vmem:[#allocation2 + $0x3b8] sm:$0xff]  ;;  %v935_v44 = vld [vmem:[#allocation2 + $0x4a0] sm:$0xff] }
  0x34   : > { %1650 = vmatmul.msk.f32.gmra.mxu0 %vm237_vm0, %v193_v36  ;;  %1666 = vmatmul.msk.f32.gmra.mxu1 %vm237_vm0, %v193_v36  ;;  %v512_v36 = vld [vmem:[#allocation2 + $0x1c0] sm:$0xff] }
  0x35   : > { %689 = vmatpush.msrb.mxu0 %v495_v46  ;;  %754 = vmatpush.msrb.mxu1 %v527_v47  ;;  %v938_v46 = vld [vmem:[#allocation2 + $0x4b8] sm:$0xff] }
  0x36   : > { %626 = vmatpush.msra.mxu3 %v522_v21  ;;  %562 = vmatpush.msra.mxu2 %v488_v22 }
  0x37   : > { %690 = vmatpush.msrb.mxu0 %v493_v49  ;;  %755 = vmatpush.msrb.mxu1 %v525_v50 }
  0x38   : > { %627 = vmatpush.msra.mxu3 %v520_v23  ;;  %563 = vmatpush.msra.mxu2 %v486_v25  ;;  %v895_v25 = vld [vmem:[#allocation2 + $0x360] sm:$0xff] }
  0x39   : > { %691 = vmatpush.msrb.mxu0 %v491_v52  ;;  %756 = vmatpush.msrb.mxu1 %v523_v53  ;;  %v901_v53 = vld [vmem:[#allocation2 + $0x390] sm:$0xff] }
  0x3a   : > { %628 = vmatpush.msra.mxu3 %v518_v26  ;;  %564 = vmatpush.msra.mxu2 %v484_v29  ;;  %v898_v26 = vld [vmem:[#allocation2 + $0x378] sm:$0xff] }
  0x3b   : > { %692 = vmatpush.msrb.mxu0 %v489_v55  ;;  %757 = vmatpush.msrb.mxu1 %v521_v58  ;;  %v933_v55 = vld [vmem:[#allocation2 + $0x490] sm:$0xff] }
  0x3c   : > { %1651 = vmatmul.msk.f32.gmra.mxu0 %vm237_vm0, %v194_v39  ;;  %1667 = vmatmul.msk.f32.gmra.mxu1 %vm237_vm0, %v194_v39  ;;  %v905_v39 = vld [vmem:[#allocation2 + $0x3b0] sm:$0xff] }
  0x3d   : > { %693 = vmatpush.msrb.mxu0 %v487_v2  ;;  %758 = vmatpush.msrb.mxu1 %v519_v5  ;;  %v902_v2 = vld [vmem:[#allocation2 + $0x398] sm:$0xff] }
  0x3e   : > { %629 = vmatpush.msra.mxu3 %v516_v30  ;;  %565 = vmatpush.msra.mxu2 %v482_v31 }
  0x3f   : > { %694 = vmatpush.msrb.mxu0 %v485_v13  ;;  %759 = vmatpush.msrb.mxu1 %v517_v16  ;;  %v897_v13 = vld [vmem:[#allocation2 + $0x370] sm:$0xff]  ;;  %v932_v16 = vld [vmem:[#allocation2 + $0x488] sm:$0xff] }
  0x40   : > { %630 = vmatpush.msra.mxu3 %v514_v32  ;;  %566 = vmatpush.msra.mxu2 %v480_v33 }
  0x41   : > { %695 = vmatpush.msrb.mxu0 %v483_v24  ;;  %760 = vmatpush.msrb.mxu1 %v515_v28  ;;  %v930_v28 = vld [vmem:[#allocation2 + $0x478] sm:$0xff] }
  0x42   : > { %631 = vmatpush.msra.mxu3 %v512_v36  ;;  %946 = vmatpush.msrb.mxu2 %v905_v39  ;;  %v925_v39 = vld [vmem:[#allocation2 + $0x450] sm:$0xff] }
  0x43   : > { %696 = vmatpush.msrb.mxu0 %v481_v34  ;;  %761 = vmatpush.msrb.mxu1 %v513_v35 }
  0x44   : > { %1652 = vmatmul.msk.f32.gmra.mxu0 %vm237_vm0, %v195_v42  ;;  %1668 = vmatmul.msk.f32.gmra.mxu1 %vm237_vm0, %v195_v42  ;;  %v903_v42 = vld [vmem:[#allocation2 + $0x3a0] sm:$0xff] }
  0x45   : > { %1011 = vmatpush.msrb.mxu3 %v937_v40  ;;  %947 = vmatpush.msrb.mxu2 %v903_v42  ;;  %v928_v40 = vld [vmem:[#allocation2 + $0x468] sm:$0xff] }
  0x46   : > { %1076 = vmatpush.msra.mxu0 %v906_v43  ;;  %1141 = vmatpush.msra.mxu1 %v938_v46 }
  0x47   : > { %1012 = vmatpush.msrb.mxu3 %v935_v44  ;;  %948 = vmatpush.msrb.mxu2 %v901_v53  ;;  %v923_v53 = vld [vmem:[#allocation2 + $0x440] sm:$0xff] }
  0x48   : > { %1142 = vmatpush.msra.mxu1 %v936_v56 }
  0x49   : > { %1013 = vmatpush.msrb.mxu3 %v933_v55  ;;  %949 = vmatpush.msrb.mxu2 %v899_v1  ;;  %v921_v1 = vld [vmem:[#allocation2 + $0x430] sm:$0xff] }
  0x4a   : > { %1143 = vmatpush.msra.mxu1 %v934_v4 }
  0x4b   : > { %1014 = vmatpush.msrb.mxu3 %v931_v3  ;;  %950 = vmatpush.msrb.mxu2 %v897_v13  ;;  %v919_v13 = vld [vmem:[#allocation2 + $0x420] sm:$0xff] }
  0x4c   : > { %1653 = vmatmul.msk.f32.gmra.mxu0 %vm237_vm0, %v196_v45  ;;  %1669 = vmatmul.msk.f32.gmra.mxu1 %vm237_vm0, %v196_v45  ;;  %v231_v45 = vld [vmem:[%s2121_s2] ss:$4 sm:$0x3] }
  0x4d   : > { %v1875_v47 = vperm.slane %v231_v45, 0  ;;  %1015 = vmatpush.msrb.mxu3 %v929_v15  ;;  %1144 = vmatpush.msra.mxu1 %v932_v16 }
  0x4e   : > { %951 = vmatpush.msrb.mxu2 %v895_v25  ;;  %v917_v25 = vld [vmem:[#allocation2 + $0x410] sm:$0xff] }
  0x4f   : > { %1145 = vmatpush.msra.mxu1 %v930_v28 }
  0x51   : > { %1146 = vmatpush.msra.mxu1 %v928_v40 }
  0x54   : > { %1654 = vmatmul.msk.f32.gmra.mxu0 %vm237_vm0, %v197_v48  ;;  %1670 = vmatmul.msk.f32.gmra.mxu1 %vm237_vm0, %v197_v48  ;;  %v1877_v48 = vperm.slane %v231_v45, 1 }
  0x5c   : > { %1655 = vmatmul.msk.f32.gmra.mxu0 %vm237_vm0, %v198_v51  ;;  %1671 = vmatmul.msk.f32.gmra.mxu1 %vm237_vm0, %v198_v51 }
  0x64   : > { %1656 = vmatmul.msk.f32.gmra.mxu0 %vm237_vm0, %v199_v54  ;;  %1672 = vmatmul.msk.f32.gmra.mxu1 %vm237_vm0, %v199_v54  ;;  %v904_v54 = vld [vmem:[#allocation2 + $0x3a8] sm:$0xff] }
  0x65   : > { %1077 = vmatpush.msra.mxu0 %v904_v54  ;;  %v926_v54 = vld [vmem:[#allocation2 + $0x458] sm:$0xff] }
  0x66   : > { %1147 = vmatpush.msra.mxu1 %v926_v54 }
  0x67   : > { %1078 = vmatpush.msra.mxu0 %v902_v2  ;;  %v924_v2 = vld [vmem:[#allocation2 + $0x448] sm:$0xff] }
  0x68   : > { %1148 = vmatpush.msra.mxu1 %v924_v2 }
  0x69   : > { %1079 = vmatpush.msra.mxu0 %v900_v14  ;;  %v922_v14 = vld [vmem:[#allocation2 + $0x438] sm:$0xff] }
  0x6a   : > { %1149 = vmatpush.msra.mxu1 %v922_v14 }
  0x6b   : > { %1080 = vmatpush.msra.mxu0 %v898_v26  ;;  %v920_v26 = vld [vmem:[#allocation2 + $0x428] sm:$0xff] }
  0x6c   : > { %1657 = vmatmul.msk.f32.gmra.mxu0 %vm237_vm0, %v200_v61  ;;  %1673 = vmatmul.msk.f32.gmra.mxu1 %vm237_vm0, %v200_v61 }
  0x6d   : > { %1150 = vmatpush.msra.mxu1 %v920_v26 }
  0x74   : > { %1658 = vmatmul.msk.f32.gmra.mxu0 %vm237_vm0, %v201_v8  ;;  %1674 = vmatmul.msk.f32.gmra.mxu1 %vm237_vm0, %v201_v8 }
  0x7c   : > { %1659 = vmatmul.msk.f32.gmra.mxu0 %vm237_vm0, %v202_v19  ;;  %1675 = vmatmul.msk.f32.gmra.mxu1 %vm237_vm0, %v202_v19 }
  0x84   : > { %1660 = vmatmul.msk.f32.gmra.mxu0 %vm237_vm0, %v203_v27  ;;  %1676 = vmatmul.msk.f32.gmra.mxu1 %vm237_vm0, %v203_v27  ;;  %v927_v27 = vld [vmem:[#allocation2 + $0x460] sm:$0xff] }
  0x85   : > { %1016 = vmatpush.msrb.mxu3 %v927_v27 }
  0x87   : > { %1017 = vmatpush.msrb.mxu3 %v925_v39 }
  0x89   : > { %1018 = vmatpush.msrb.mxu3 %v923_v53 }
  0x8b   : > { %1019 = vmatpush.msrb.mxu3 %v921_v1 }
  0x8c   : > { %1661 = vmatmul.msk.f32.gmra.mxu0 %vm237_vm0, %v204_v37  ;;  %1677 = vmatmul.msk.f32.gmra.mxu1 %vm237_vm0, %v204_v37  ;;  %v893_v37 = vld [vmem:[#allocation2 + $0x350] sm:$0xff] }
  0x8d   : > { %952 = vmatpush.msrb.mxu2 %v893_v37  ;;  %1020 = vmatpush.msrb.mxu3 %v919_v13  ;;  %v915_v37 = vld [vmem:[#allocation2 + $0x400] sm:$0xff] }
  0x8f   : > { %1021 = vmatpush.msrb.mxu3 %v917_v25  ;;  %v908_v25 = vld [vmem:[#allocation2 + $0x3c8] sm:$0xff] }
  0x91   : > { %1022 = vmatpush.msrb.mxu3 %v915_v37 }
  0x94   : > { %1662 = vmatmul.msk.f32.gmra.mxu0 %vm237_vm0, %v205_v38  ;;  %1678 = vmatmul.msk.f32.gmra.mxu1 %vm237_vm0, %v205_v38  ;;  %v896_v38 = vld [vmem:[#allocation2 + $0x368] sm:$0xff] }
  0x95   : > { %1081 = vmatpush.msra.mxu0 %v896_v38  ;;  %v918_v38 = vld [vmem:[#allocation2 + $0x418] sm:$0xff] }
  0x96   : > { %1151 = vmatpush.msra.mxu1 %v918_v38 }
  0x9c   : > { %1663 = vmatmul.msk.f32.gmra.mxu0 %vm237_vm0, %v206_v41  ;;  %1679 = vmatmul.msk.f32.gmra.mxu1 %vm237_vm0, %v206_v41 }
  0xa1   : > { %v303_v49 = vpop.f32.mrf.mxu0  ;;  %v368_v50 = vpop.f32.mrf.mxu1 }
  0xa2   : > { %v304_v51 = vadd.f32 %v303_v49, %v1875_v47  ;;  %v369_v52 = vadd.f32 %v368_v50, %v1877_v48 }
  0xa4   : > { %v416_v57 = vmul.f32 0.01, %v304_v51  ;;  %v417_v58 = vmul.f32 0.01, %v369_v52 }
  0xa6   : > { %v448_v59 = vmax.f32 %v304_v51, %v416_v57  ;;  %v449_v60 = vmax.f32 %v369_v52, %v417_v58  ;;  %v891_v51 = vld [vmem:[#allocation2 + $0x340] sm:$0xff]  ;;  %v894_v52 = vld [vmem:[#allocation2 + $0x358] sm:$0xff] }
  0xa7   : > { %953 = vmatpush.msrb.mxu2 %v891_v51  ;;  %1082 = vmatpush.msra.mxu0 %v894_v52  ;;  %v913_v51 = vld [vmem:[#allocation2 + $0x3f0] sm:$0xff]  ;;  %v916_v52 = vld [vmem:[#allocation2 + $0x408] sm:$0xff] }
  0xa8   : > { %567 = vmatmul.f32.vlgmr.msra.gmra.mxu2 %v448_v59  ;;  %632 = vmatmul.f32.vlgmr.msra.gmra.mxu3 %v449_v60 }
  0xa9   : > { %697 = vmatmul.f32.vlgmr.msrb.gmra.mxu0 %v448_v59  ;;  %762 = vmatmul.f32.vlgmr.msrb.gmra.mxu1 %v449_v60  ;;  %v306_v61 = vpop.f32.mrf.mxu0  ;;  %v371_v62 = vpop.f32.mrf.mxu1 }
  0xaa   : > { %v307_v63 = vadd.f32 %v306_v61, %v1875_v47  ;;  %v372_v0 = vadd.f32 %v371_v62, %v1877_v48  ;;  %1023 = vmatpush.msrb.mxu3 %v913_v51  ;;  %1152 = vmatpush.msra.mxu1 %v916_v52  ;;  %v1301_v51 = vld [vmem:[#allocation2 + $0x6b0] sm:$0xff] }
  0xac   : > { %v418_v5 = vmul.f32 0.01, %v307_v63  ;;  %v419_v6 = vmul.f32 0.01, %v372_v0 }
  0xae   : > { %v450_v7 = vmax.f32 %v307_v63, %v418_v5  ;;  %v451_v8 = vmax.f32 %v372_v0, %v419_v6  ;;  %v889_v63 = vld [vmem:[#allocation2 + $0x330] sm:$0xff]  ;;  %v892_v0 = vld [vmem:[#allocation2 + $0x348] sm:$0xff] }
  0xaf   : > { %954 = vmatpush.msrb.mxu2 %v889_v63  ;;  %1083 = vmatpush.msra.mxu0 %v892_v0  ;;  %v911_v63 = vld [vmem:[#allocation2 + $0x3e0] sm:$0xff]  ;;  %v914_v0 = vld [vmem:[#allocation2 + $0x3f8] sm:$0xff] }
  0xb0   : > { %570 = vmatmul.f32.gmra.mxu2 %v450_v7  ;;  %635 = vmatmul.f32.gmra.mxu3 %v451_v8 }
  0xb1   : > { %700 = vmatmul.f32.gmra.mxu0 %v450_v7  ;;  %765 = vmatmul.f32.gmra.mxu1 %v451_v8  ;;  %v309_v9 = vpop.f32.mrf.mxu0  ;;  %v374_v10 = vpop.f32.mrf.mxu1 }
  0xb2   : > { %v310_v11 = vadd.f32 %v309_v9, %v1875_v47  ;;  %v375_v12 = vadd.f32 %v374_v10, %v1877_v48  ;;  %1024 = vmatpush.msrb.mxu3 %v911_v63  ;;  %1153 = vmatpush.msra.mxu1 %v914_v0 }
  0xb4   : > { %v420_v17 = vmul.f32 0.01, %v310_v11  ;;  %v421_v18 = vmul.f32 0.01, %v375_v12 }
  0xb6   : > { %v452_v19 = vmax.f32 %v310_v11, %v420_v17  ;;  %v453_v20 = vmax.f32 %v375_v12, %v421_v18  ;;  %v887_v11 = vld [vmem:[#allocation2 + $0x320] sm:$0xff]  ;;  %v890_v12 = vld [vmem:[#allocation2 + $0x338] sm:$0xff] }
  0xb7   : > { %955 = vmatpush.msrb.mxu2 %v887_v11  ;;  %1084 = vmatpush.msra.mxu0 %v890_v12 }
  0xb8   : > { %573 = vmatmul.f32.gmra.mxu2 %v452_v19  ;;  %638 = vmatmul.f32.gmra.mxu3 %v453_v20 }
  0xb9   : > { %703 = vmatmul.f32.gmra.mxu0 %v452_v19  ;;  %768 = vmatmul.f32.gmra.mxu1 %v453_v20  ;;  %v312_v21 = vpop.f32.mrf.mxu0  ;;  %v377_v22 = vpop.f32.mrf.mxu1 }
  0xba   : > { %v313_v23 = vadd.f32 %v312_v21, %v1875_v47  ;;  %v378_v24 = vadd.f32 %v377_v22, %v1877_v48 }
  0xbc   : > { %v422_v29 = vmul.f32 0.01, %v313_v23  ;;  %v423_v30 = vmul.f32 0.01, %v378_v24 }
  0xbe   : > { %v454_v31 = vmax.f32 %v313_v23, %v422_v29  ;;  %v455_v32 = vmax.f32 %v378_v24, %v423_v30  ;;  %v885_v23 = vld [vmem:[#allocation2 + $0x310] sm:$0xff]  ;;  %v888_v24 = vld [vmem:[#allocation2 + $0x328] sm:$0xff] }
  0xbf   : > { %956 = vmatpush.msrb.mxu2 %v885_v23  ;;  %1085 = vmatpush.msra.mxu0 %v888_v24  ;;  %v907_v24 = vld [vmem:[#allocation2 + $0x3c0] sm:$0xff] }
  0xc0   : > { %576 = vmatmul.f32.gmra.mxu2 %v454_v31  ;;  %641 = vmatmul.f32.gmra.mxu3 %v455_v32 }
  0xc1   : > { %706 = vmatmul.f32.gmra.mxu0 %v454_v31  ;;  %771 = vmatmul.f32.gmra.mxu1 %v455_v32  ;;  %v315_v33 = vpop.f32.mrf.mxu0  ;;  %v380_v34 = vpop.f32.mrf.mxu1 }
  0xc2   : > { %v316_v35 = vadd.f32 %v315_v33, %v1875_v47  ;;  %v381_v36 = vadd.f32 %v380_v34, %v1877_v48 }
  0xc4   : > { %v424_v41 = vmul.f32 0.01, %v316_v35  ;;  %v425_v42 = vmul.f32 0.01, %v381_v36 }
  0xc6   : > { %v456_v43 = vmax.f32 %v316_v35, %v424_v41  ;;  %v457_v44 = vmax.f32 %v381_v36, %v425_v42  ;;  %v883_v35 = vld [vmem:[#allocation2 + $0x300] sm:$0xff]  ;;  %v886_v36 = vld [vmem:[#allocation2 + $0x318] sm:$0xff] }
  0xc7   : > { %957 = vmatpush.msrb.mxu2 %v883_v35  ;;  %1086 = vmatpush.msra.mxu0 %v886_v36 }
  0xc8   : > { %579 = vmatmul.f32.gmra.mxu2 %v456_v43  ;;  %644 = vmatmul.f32.gmra.mxu3 %v457_v44 }
  0xc9   : > { %709 = vmatmul.f32.gmra.mxu0 %v456_v43  ;;  %774 = vmatmul.f32.gmra.mxu1 %v457_v44  ;;  %v318_v45 = vpop.f32.mrf.mxu0  ;;  %v383_v46 = vpop.f32.mrf.mxu1 }
  0xca   : > { %v319_v49 = vadd.f32 %v318_v45, %v1875_v47  ;;  %v384_v50 = vadd.f32 %v383_v46, %v1877_v48 }
  0xcc   : > { %v426_v55 = vmul.f32 0.01, %v319_v49  ;;  %v427_v56 = vmul.f32 0.01, %v384_v50 }
  0xce   : > { %v458_v57 = vmax.f32 %v319_v49, %v426_v55  ;;  %v459_v58 = vmax.f32 %v384_v50, %v427_v56  ;;  %v881_v49 = vld [vmem:[#allocation2 + $0x2f0] sm:$0xff]  ;;  %v884_v50 = vld [vmem:[#allocation2 + $0x308] sm:$0xff] }
  0xcf   : > { %958 = vmatpush.msrb.mxu2 %v881_v49  ;;  %1087 = vmatpush.msra.mxu0 %v884_v50  ;;  %v1680_v49 = vld [vmem:[%s2121_s2 + $0x1] ss:$4 sm:$0x3]  ;;  %v1285_v50 = vld [vmem:[#allocation2 + $0x5b0] sm:$0xff] }
  0xd0   : > { %582 = vmatmul.f32.gmra.mxu2 %v458_v57  ;;  %647 = vmatmul.f32.gmra.mxu3 %v459_v58  ;;  %v1914_v52 = vperm.slane %v1680_v49, 1 }
  0xd1   : > { %712 = vmatmul.f32.gmra.mxu0 %v458_v57  ;;  %777 = vmatmul.f32.gmra.mxu1 %v459_v58  ;;  %v321_v59 = vpop.f32.mrf.mxu0  ;;  %v386_v60 = vpop.f32.mrf.mxu1 }
  0xd2   : > { %v322_v61 = vadd.f32 %v321_v59, %v1875_v47  ;;  %v387_v62 = vadd.f32 %v386_v60, %v1877_v48 }
  0xd4   : > { %v428_v3 = vmul.f32 0.01, %v322_v61  ;;  %v429_v4 = vmul.f32 0.01, %v387_v62 }
  0xd6   : > { %v460_v5 = vmax.f32 %v322_v61, %v428_v3  ;;  %v461_v6 = vmax.f32 %v387_v62, %v429_v4  ;;  %v879_v61 = vld [vmem:[#allocation2 + $0x2e0] sm:$0xff]  ;;  %v882_v62 = vld [vmem:[#allocation2 + $0x2f8] sm:$0xff] }
  0xd7   : > { %959 = vmatpush.msrb.mxu2 %v879_v61  ;;  %1088 = vmatpush.msra.mxu0 %v882_v62 }
  0xd8   : > { %585 = vmatmul.f32.gmra.mxu2 %v460_v5  ;;  %650 = vmatmul.f32.gmra.mxu3 %v461_v6 }
  0xd9   : > { %715 = vmatmul.f32.gmra.mxu0 %v460_v5  ;;  %780 = vmatmul.f32.gmra.mxu1 %v461_v6  ;;  %v324_v7 = vpop.f32.mrf.mxu0  ;;  %v389_v8 = vpop.f32.mrf.mxu1 }
  0xda   : > { %v325_v9 = vadd.f32 %v324_v7, %v1875_v47  ;;  %v390_v10 = vadd.f32 %v389_v8, %v1877_v48  ;;  %v877_v7 = vld [vmem:[#allocation2 + $0x2d0] sm:$0xff]  ;;  %v880_v8 = vld [vmem:[#allocation2 + $0x2e8] sm:$0xff] }
  0xdb   : > { %960 = vmatpush.msrb.mxu2 %v877_v7  ;;  %1089 = vmatpush.msra.mxu0 %v880_v8 }
  0xdc   : > { %v430_v15 = vmul.f32 0.01, %v325_v9  ;;  %v431_v16 = vmul.f32 0.01, %v390_v10 }
  0xde   : > { %v462_v17 = vmax.f32 %v325_v9, %v430_v15  ;;  %v463_v18 = vmax.f32 %v390_v10, %v431_v16 }
  0xe0   : > { %588 = vmatmul.f32.gmra.mxu2 %v462_v17  ;;  %653 = vmatmul.f32.gmra.mxu3 %v463_v18 }
  0xe1   : > { %718 = vmatmul.f32.gmra.mxu0 %v462_v17  ;;  %783 = vmatmul.f32.gmra.mxu1 %v463_v18  ;;  %v327_v19 = vpop.f32.mrf.mxu0  ;;  %v392_v20 = vpop.f32.mrf.mxu1  ;;  %v912_v17 = vld [vmem:[#allocation2 + $0x3e8] sm:$0xff] }
  0xe2   : > { %v328_v21 = vadd.f32 %v327_v19, %v1875_v47  ;;  %v393_v22 = vadd.f32 %v392_v20, %v1877_v48  ;;  %1154 = vmatpush.msra.mxu1 %v912_v17  ;;  %v909_v20 = vld [vmem:[#allocation2 + $0x3d0] sm:$0xff] }
  0xe3   : > { %1025 = vmatpush.msrb.mxu3 %v909_v20  ;;  %v1298_v20 = vld [vmem:[#allocation2 + $0x680] sm:$0xff] }
  0xe4   : > { %v432_v27 = vmul.f32 0.01, %v328_v21  ;;  %v433_v28 = vmul.f32 0.01, %v393_v22 }
  0xe5   : > { %1026 = vmatpush.msrb.mxu3 %v907_v24 }
  0xe6   : > { %v464_v29 = vmax.f32 %v328_v21, %v432_v27  ;;  %v465_v30 = vmax.f32 %v393_v22, %v433_v28  ;;  %v910_v21 = vld [vmem:[#allocation2 + $0x3d8] sm:$0xff] }
  0xe7   : > { %1155 = vmatpush.msra.mxu1 %v910_v21  ;;  %1372 = vmatpush.msra.mxu3 %v1301_v51 }
  0xe8   : > { %591 = vmatmul.f32.gmra.mxu2 %v464_v29  ;;  %656 = vmatmul.f32.gmra.mxu3 %v465_v30 }
  0xe9   : > { %721 = vmatmul.f32.gmra.mxu0 %v464_v29  ;;  %786 = vmatmul.f32.gmra.mxu1 %v465_v30  ;;  %v330_v31 = vpop.f32.mrf.mxu0  ;;  %v395_v32 = vpop.f32.mrf.mxu1  ;;  %v878_v30 = vld [vmem:[#allocation2 + $0x2d8] sm:$0xff] }
  0xea   : > { %v331_v33 = vadd.f32 %v330_v31, %v1875_v47  ;;  %v396_v34 = vadd.f32 %v395_v32, %v1877_v48  ;;  %1156 = vmatpush.msra.mxu1 %v908_v25  ;;  %1090 = vmatpush.msra.mxu0 %v878_v30 }
  0xec   : > { %v434_v39 = vmul.f32 0.01, %v331_v33  ;;  %v435_v40 = vmul.f32 0.01, %v396_v34 }
  0xee   : > { %v466_v41 = vmax.f32 %v331_v33, %v434_v39  ;;  %v467_v42 = vmax.f32 %v396_v34, %v435_v40  ;;  %v875_v33 = vld [vmem:[#allocation2 + $0x2c0] sm:$0xff]  ;;  %v876_v34 = vld [vmem:[#allocation2 + $0x2c8] sm:$0xff] }
  0xef   : > { %961 = vmatpush.msrb.mxu2 %v875_v33  ;;  %1091 = vmatpush.msra.mxu0 %v876_v34  ;;  %v1281_v33 = vld [vmem:[#allocation2 + $0x570] sm:$0xff] }
  0xf0   : > { %594 = vmatmul.f32.gmra.mxu2 %v466_v41  ;;  %659 = vmatmul.f32.gmra.mxu3 %v467_v42  ;;  %v1297_v34 = vld [vmem:[#allocation2 + $0x670] sm:$0xff] }
  0xf1   : > { %724 = vmatmul.f32.gmra.mxu0 %v466_v41  ;;  %789 = vmatmul.f32.gmra.mxu1 %v467_v42  ;;  %v333_v43 = vpop.f32.mrf.mxu0  ;;  %v398_v44 = vpop.f32.mrf.mxu1 }
  0xf2   : > { %v334_v45 = vadd.f32 %v333_v43, %v1875_v47  ;;  %v399_v46 = vadd.f32 %v398_v44, %v1877_v48  ;;  %1307 = vmatpush.msra.mxu2 %v1285_v50 }
  0xf4   : > { %v436_v53 = vmul.f32 0.01, %v334_v45  ;;  %v437_v54 = vmul.f32 0.01, %v399_v46 }
  0xf6   : > { %v468_v55 = vmax.f32 %v334_v45, %v436_v53  ;;  %v469_v56 = vmax.f32 %v399_v46, %v437_v54  ;;  %v1917_v54 = vperm.slane %v1680_v49, 0 }
  0xf8   : > { %597 = vmatmul.f32.gmra.mxu2 %v468_v55  ;;  %662 = vmatmul.f32.gmra.mxu3 %v469_v56 }
  0xf9   : > { %727 = vmatmul.f32.gmra.mxu0 %v468_v55  ;;  %792 = vmatmul.f32.gmra.mxu1 %v469_v56  ;;  %v336_v57 = vpop.f32.mrf.mxu0  ;;  %v401_v58 = vpop.f32.mrf.mxu1  ;;  %v1284_v56 = vld [vmem:[#allocation2 + $0x5a0] sm:$0xff] }
  0xfa   : > { %v337_v59 = vadd.f32 %v336_v57, %v1875_v47  ;;  %v402_v60 = vadd.f32 %v401_v58, %v1877_v48  ;;  %v1300_v57 = vld [vmem:[#allocation2 + $0x6a0] sm:$0xff]  ;;  %1308 = vmatpush.msra.mxu2 %v1284_v56 }
  0xfb   : > { %1373 = vmatpush.msra.mxu3 %v1300_v57  ;;  %v1296_v56 = vld [vmem:[#allocation2 + $0x660] sm:$0xff] }
  0xfc   : > { %v438_v1 = vmul.f32 0.01, %v337_v59  ;;  %v439_v2 = vmul.f32 0.01, %v402_v60 }
  0xfe   : > { %v470_v3 = vmax.f32 %v337_v59, %v438_v1  ;;  %v471_v4 = vmax.f32 %v402_v60, %v439_v2 }
 0x100   : > { %600 = vmatmul.f32.gmra.mxu2 %v470_v3  ;;  %665 = vmatmul.f32.gmra.mxu3 %v471_v4 }
 0x101   : > { %730 = vmatmul.f32.gmra.mxu0 %v470_v3  ;;  %795 = vmatmul.f32.gmra.mxu1 %v471_v4  ;;  %v339_v5 = vpop.f32.mrf.mxu0  ;;  %v404_v6 = vpop.f32.mrf.mxu1 }
 0x102   : > { %v340_v9 = vadd.f32 %v339_v5, %v1875_v47  ;;  %v405_v10 = vadd.f32 %v404_v6, %v1877_v48  ;;  %v1283_v5 = vld [vmem:[#allocation2 + $0x590] sm:$0xff] }
 0x103   : > { %v1299_v6 = vld [vmem:[#allocation2 + $0x690] sm:$0xff]  ;;  %1309 = vmatpush.msra.mxu2 %v1283_v5 }
 0x104   : > { %v440_v11 = vmul.f32 0.01, %v340_v9  ;;  %v441_v12 = vmul.f32 0.01, %v405_v10  ;;  %1374 = vmatpush.msra.mxu3 %v1299_v6  ;;  %v1279_v5 = vld [vmem:[#allocation2 + $0x550] sm:$0xff] }
 0x105   : > { %v1295_v6 = vld [vmem:[#allocation2 + $0x650] sm:$0xff] }
 0x106   : > { %v472_v13 = vmax.f32 %v340_v9, %v440_v11  ;;  %v473_v14 = vmax.f32 %v405_v10, %v441_v12  ;;  %1375 = vmatpush.msra.mxu3 %v1298_v20  ;;  %v1294_v20 = vld [vmem:[#allocation2 + $0x640] sm:$0xff] }
 0x108   : > { %603 = vmatmul.f32.gmra.mxu2 %v472_v13  ;;  %668 = vmatmul.f32.gmra.mxu3 %v473_v14 }
 0x109   : > { %733 = vmatmul.f32.gmra.mxu0 %v472_v13  ;;  %798 = vmatmul.f32.gmra.mxu1 %v473_v14  ;;  %v342_v15 = vpop.f32.mrf.mxu0  ;;  %v407_v16 = vpop.f32.mrf.mxu1 }
 0x10a   : > { %v343_v18 = vadd.f32 %v342_v15, %v1875_v47  ;;  %v408_v19 = vadd.f32 %v407_v16, %v1877_v48  ;;  %1376 = vmatpush.msra.mxu3 %v1297_v34  ;;  %v1293_v34 = vld [vmem:[#allocation2 + $0x630] sm:$0xff] }
 0x10c   : > { %v442_v22 = vmul.f32 0.01, %v343_v18  ;;  %v443_v23 = vmul.f32 0.01, %v408_v19  ;;  %1377 = vmatpush.msra.mxu3 %v1296_v56 }
 0x10e   : > { %v474_v26 = vmax.f32 %v343_v18, %v442_v22  ;;  %v475_v27 = vmax.f32 %v408_v19, %v443_v23  ;;  %v1282_v19 = vld [vmem:[#allocation2 + $0x580] sm:$0xff]  ;;  %1378 = vmatpush.msra.mxu3 %v1295_v6 }
 0x10f   : > { %1310 = vmatpush.msra.mxu2 %v1282_v19  ;;  %v1278_v19 = vld [vmem:[#allocation2 + $0x540] sm:$0xff] }
 0x110   : > { %606 = vmatmul.f32.gmra.mxu2 %v474_v26  ;;  %671 = vmatmul.f32.gmra.mxu3 %v475_v27 }
 0x111   : > { %736 = vmatmul.f32.gmra.mxu0 %v474_v26  ;;  %801 = vmatmul.f32.gmra.mxu1 %v475_v27  ;;  %v345_v28 = vpop.f32.mrf.mxu0  ;;  %v410_v29 = vpop.f32.mrf.mxu1 }
 0x112   : > { %v346_v31 = vadd.f32 %v345_v28, %v1875_v47  ;;  %v411_v32 = vadd.f32 %v410_v29, %v1877_v48  ;;  %1311 = vmatpush.msra.mxu2 %v1281_v33  ;;  %1379 = vmatpush.msra.mxu3 %v1294_v20  ;;  %v1277_v33 = vld [vmem:[#allocation2 + $0x530] sm:$0xff] }
 0x114   : > { %v444_v35 = vmul.f32 0.01, %v346_v31  ;;  %v445_v36 = vmul.f32 0.01, %v411_v32  ;;  %1380 = vmatpush.msra.mxu3 %v1293_v34 }
 0x116   : > { %v476_v37 = vmax.f32 %v346_v31, %v444_v35  ;;  %v477_v38 = vmax.f32 %v411_v32, %v445_v36 }
 0x118   : > { %609 = vmatmul.f32.gmra.mxu2 %v476_v37  ;;  %674 = vmatmul.f32.gmra.mxu3 %v477_v38 }
 0x119   : > { %739 = vmatmul.f32.gmra.mxu0 %v476_v37  ;;  %804 = vmatmul.f32.gmra.mxu1 %v477_v38  ;;  %v348_v39 = vpop.f32.mrf.mxu0  ;;  %v413_v40 = vpop.f32.mrf.mxu1 }
 0x11a   : > { %v349_v41 = vadd.f32 %v348_v39, %v1875_v47  ;;  %v414_v42 = vadd.f32 %v413_v40, %v1877_v48 }
 0x11c   : > { %v446_v43 = vmul.f32 0.01, %v349_v41  ;;  %v447_v44 = vmul.f32 0.01, %v414_v42 }
 0x11e   : > { %v478_v45 = vmax.f32 %v349_v41, %v446_v43  ;;  %v479_v46 = vmax.f32 %v414_v42, %v447_v44 }
 0x120   : > { %612 = vmatmul.f32.gmra.mxu2 %v478_v45  ;;  %677 = vmatmul.f32.gmra.mxu3 %v479_v46 }
 0x121   : > { %742 = vmatmul.f32.gmra.mxu0 %v478_v45  ;;  %807 = vmatmul.f32.gmra.mxu1 %v479_v46 }
 0x126   : > { %v698_v47 = vpop.f32.mrf.mxu0  ;;  %v763_v48 = vpop.f32.mrf.mxu1 }
 0x127   : > { %v699_v53 = vadd.f32 %v698_v47, %v1914_v52 }
 0x129   : > { %v764_v55 = vadd.f32 %v763_v48, %v699_v53 }
 0x12b   : > { %v812_v58 = vmul.f32 0.01, %v764_v55  ;;  %v568_v59 = vpop.f32.mrf.mxu2  ;;  %v633_v60 = vpop.f32.mrf.mxu3 }
 0x12c   : > { %v569_v61 = vadd.f32 %v568_v59, %v1917_v54 }
 0x12d   : > { %v844_v62 = vmax.f32 %v764_v55, %v812_v58  ;;  %v1280_v55 = vld [vmem:[#allocation2 + $0x560] sm:$0xff] }
 0x12e   : > { %v634_v63 = vadd.f32 %v633_v60, %v569_v61  ;;  %v701_v0 = vpop.f32.mrf.mxu0  ;;  %v766_v1 = vpop.f32.mrf.mxu1  ;;  %1312 = vmatpush.msra.mxu2 %v1280_v55 }
 0x12f   : > { %v702_v2 = vadd.f32 %v701_v0, %v1914_v52  ;;  %1027 = vmatmul.f32.vlgmr.msrb.gmra.mxu3 %v844_v62  ;;  %1157 = vmatmul.f32.vlgmr.msra.gmra.mxu1 %v844_v62 }
 0x130   : > { %v811_v3 = vmul.f32 0.01, %v634_v63  ;;  %1313 = vmatpush.msra.mxu2 %v1279_v5 }
 0x131   : > { %v767_v4 = vadd.f32 %v766_v1, %v702_v2 }
 0x132   : > { %v843_v7 = vmax.f32 %v634_v63, %v811_v3  ;;  %1314 = vmatpush.msra.mxu2 %v1278_v19 }
 0x133   : > { %v571_v8 = vpop.f32.mrf.mxu2  ;;  %v636_v9 = vpop.f32.mrf.mxu3  ;;  %v814_v10 = vmul.f32 0.01, %v767_v4 }
 0x134   : > { %v572_v11 = vadd.f32 %v571_v8, %v1917_v54  ;;  %962 = vmatmul.f32.vlgmr.msrb.gmra.mxu2 %v843_v7  ;;  %1092 = vmatmul.f32.vlgmr.msra.gmra.mxu0 %v843_v7 }
 0x135   : > { %v846_v12 = vmax.f32 %v767_v4, %v814_v10  ;;  %1315 = vmatpush.msra.mxu2 %v1277_v33 }
 0x136   : > { %v637_v13 = vadd.f32 %v636_v9, %v572_v11  ;;  %v704_v14 = vpop.f32.mrf.mxu0  ;;  %v769_v15 = vpop.f32.mrf.mxu1 }
 0x137   : > { %v705_v16 = vadd.f32 %v704_v14, %v1914_v52  ;;  %1030 = vmatmul.f32.gmra.mxu3 %v846_v12  ;;  %1160 = vmatmul.f32.gmra.mxu1 %v846_v12 }
 0x138   : > { %v813_v17 = vmul.f32 0.01, %v637_v13 }
 0x139   : > { %v770_v18 = vadd.f32 %v769_v15, %v705_v16 }
 0x13a   : > { %v845_v21 = vmax.f32 %v637_v13, %v813_v17 }
 0x13b   : > { %v574_v22 = vpop.f32.mrf.mxu2  ;;  %v639_v23 = vpop.f32.mrf.mxu3  ;;  %v816_v24 = vmul.f32 0.01, %v770_v18 }
 0x13c   : > { %v575_v25 = vadd.f32 %v574_v22, %v1917_v54  ;;  %965 = vmatmul.f32.gmra.mxu2 %v845_v21  ;;  %1095 = vmatmul.f32.gmra.mxu0 %v845_v21 }
 0x13d   : > { %v848_v26 = vmax.f32 %v770_v18, %v816_v24 }
 0x13e   : > { %v640_v27 = vadd.f32 %v639_v23, %v575_v25  ;;  %v707_v28 = vpop.f32.mrf.mxu0  ;;  %v772_v29 = vpop.f32.mrf.mxu1 }
 0x13f   : > { %v708_v30 = vadd.f32 %v707_v28, %v1914_v52  ;;  %1033 = vmatmul.f32.gmra.mxu3 %v848_v26  ;;  %1163 = vmatmul.f32.gmra.mxu1 %v848_v26 }
 0x140   : > { %v815_v31 = vmul.f32 0.01, %v640_v27 }
 0x141   : > { %v773_v32 = vadd.f32 %v772_v29, %v708_v30 }
 0x142   : > { %v847_v35 = vmax.f32 %v640_v27, %v815_v31 }
 0x143   : > { %v577_v36 = vpop.f32.mrf.mxu2  ;;  %v642_v37 = vpop.f32.mrf.mxu3  ;;  %v818_v38 = vmul.f32 0.01, %v773_v32 }
 0x144   : > { %v578_v39 = vadd.f32 %v577_v36, %v1917_v54  ;;  %968 = vmatmul.f32.gmra.mxu2 %v847_v35  ;;  %1098 = vmatmul.f32.gmra.mxu0 %v847_v35 }
 0x145   : > { %v850_v40 = vmax.f32 %v773_v32, %v818_v38 }
 0x146   : > { %v643_v41 = vadd.f32 %v642_v37, %v578_v39  ;;  %v710_v42 = vpop.f32.mrf.mxu0  ;;  %v775_v43 = vpop.f32.mrf.mxu1 }
 0x147   : > { %v711_v44 = vadd.f32 %v710_v42, %v1914_v52  ;;  %1036 = vmatmul.f32.gmra.mxu3 %v850_v40  ;;  %1166 = vmatmul.f32.gmra.mxu1 %v850_v40 }
 0x148   : > { %v817_v45 = vmul.f32 0.01, %v643_v41 }
 0x149   : > { %v776_v46 = vadd.f32 %v775_v43, %v711_v44 }
 0x14a   : > { %v849_v49 = vmax.f32 %v643_v41, %v817_v45 }
 0x14b   : > { %v580_v50 = vpop.f32.mrf.mxu2  ;;  %v645_v51 = vpop.f32.mrf.mxu3  ;;  %v820_v47 = vmul.f32 0.01, %v776_v46 }
 0x14c   : > { %v581_v48 = vadd.f32 %v580_v50, %v1917_v54  ;;  %971 = vmatmul.f32.gmra.mxu2 %v849_v49  ;;  %1101 = vmatmul.f32.gmra.mxu0 %v849_v49  ;;  %v1276_v49 = vld [vmem:[#allocation2 + $0x520] sm:$0xff] }
 0x14d   : > { %v852_v53 = vmax.f32 %v776_v46, %v820_v47  ;;  %v1292_v50 = vld [vmem:[#allocation2 + $0x620] sm:$0xff]  ;;  %1316 = vmatpush.msra.mxu2 %v1276_v49 }
 0x14e   : > { %v646_v57 = vadd.f32 %v645_v51, %v581_v48  ;;  %v713_v58 = vpop.f32.mrf.mxu0  ;;  %v778_v59 = vpop.f32.mrf.mxu1  ;;  %1381 = vmatpush.msra.mxu3 %v1292_v50 }
 0x14f   : > { %v714_v60 = vadd.f32 %v713_v58, %v1914_v52  ;;  %1039 = vmatmul.f32.gmra.mxu3 %v852_v53  ;;  %1169 = vmatmul.f32.gmra.mxu1 %v852_v53 }
 0x150   : > { %v819_v61 = vmul.f32 0.01, %v646_v57 }
 0x151   : > { %v779_v62 = vadd.f32 %v778_v59, %v714_v60 }
 0x152   : > { %v851_v63 = vmax.f32 %v646_v57, %v819_v61 }
 0x153   : > { %v583_v0 = vpop.f32.mrf.mxu2  ;;  %v648_v1 = vpop.f32.mrf.mxu3  ;;  %v822_v2 = vmul.f32 0.01, %v779_v62 }
 0x154   : > { %v584_v3 = vadd.f32 %v583_v0, %v1917_v54  ;;  %974 = vmatmul.f32.gmra.mxu2 %v851_v63  ;;  %1104 = vmatmul.f32.gmra.mxu0 %v851_v63  ;;  %v1275_v63 = vld [vmem:[#allocation2 + $0x510] sm:$0xff] }
 0x155   : > { %v854_v4 = vmax.f32 %v779_v62, %v822_v2  ;;  %v1291_v0 = vld [vmem:[#allocation2 + $0x610] sm:$0xff]  ;;  %1317 = vmatpush.msra.mxu2 %v1275_v63 }
 0x156   : > { %v649_v7 = vadd.f32 %v648_v1, %v584_v3  ;;  %v716_v8 = vpop.f32.mrf.mxu0  ;;  %v781_v9 = vpop.f32.mrf.mxu1  ;;  %1382 = vmatpush.msra.mxu3 %v1291_v0 }
 0x157   : > { %v717_v10 = vadd.f32 %v716_v8, %v1914_v52  ;;  %1042 = vmatmul.f32.gmra.mxu3 %v854_v4  ;;  %1172 = vmatmul.f32.gmra.mxu1 %v854_v4 }
 0x158   : > { %v821_v11 = vmul.f32 0.01, %v649_v7 }
 0x159   : > { %v782_v12 = vadd.f32 %v781_v9, %v717_v10 }
 0x15a   : > { %v853_v13 = vmax.f32 %v649_v7, %v821_v11 }
 0x15b   : > { %v586_v14 = vpop.f32.mrf.mxu2  ;;  %v651_v15 = vpop.f32.mrf.mxu3  ;;  %v824_v16 = vmul.f32 0.01, %v782_v12 }
 0x15c   : > { %v587_v17 = vadd.f32 %v586_v14, %v1917_v54  ;;  %977 = vmatmul.f32.gmra.mxu2 %v853_v13  ;;  %1107 = vmatmul.f32.gmra.mxu0 %v853_v13  ;;  %v1274_v13 = vld [vmem:[#allocation2 + $0x500] sm:$0xff] }
 0x15d   : > { %v856_v18 = vmax.f32 %v782_v12, %v824_v16  ;;  %v1290_v14 = vld [vmem:[#allocation2 + $0x600] sm:$0xff]  ;;  %1318 = vmatpush.msra.mxu2 %v1274_v13 }
 0x15e   : > { %v652_v21 = vadd.f32 %v651_v15, %v587_v17  ;;  %v719_v22 = vpop.f32.mrf.mxu0  ;;  %v784_v23 = vpop.f32.mrf.mxu1  ;;  %1383 = vmatpush.msra.mxu3 %v1290_v14 }
 0x15f   : > { %v720_v24 = vadd.f32 %v719_v22, %v1914_v52  ;;  %1045 = vmatmul.f32.gmra.mxu3 %v856_v18  ;;  %1175 = vmatmul.f32.gmra.mxu1 %v856_v18 }
 0x160   : > { %v823_v25 = vmul.f32 0.01, %v652_v21 }
 0x161   : > { %v785_v26 = vadd.f32 %v784_v23, %v720_v24 }
 0x162   : > { %v855_v27 = vmax.f32 %v652_v21, %v823_v25 }
 0x163   : > { %v589_v28 = vpop.f32.mrf.mxu2  ;;  %v654_v29 = vpop.f32.mrf.mxu3  ;;  %v826_v30 = vmul.f32 0.01, %v785_v26 }
 0x164   : > { %v590_v31 = vadd.f32 %v589_v28, %v1917_v54  ;;  %980 = vmatmul.f32.gmra.mxu2 %v855_v27  ;;  %1110 = vmatmul.f32.gmra.mxu0 %v855_v27  ;;  %v1273_v27 = vld [vmem:[#allocation2 + $0x4f0] sm:$0xff] }
 0x165   : > { %v858_v32 = vmax.f32 %v785_v26, %v826_v30  ;;  %v1289_v28 = vld [vmem:[#allocation2 + $0x5f0] sm:$0xff]  ;;  %1319 = vmatpush.msra.mxu2 %v1273_v27 }
 0x166   : > { %v655_v35 = vadd.f32 %v654_v29, %v590_v31  ;;  %v722_v36 = vpop.f32.mrf.mxu0  ;;  %v787_v37 = vpop.f32.mrf.mxu1  ;;  %1384 = vmatpush.msra.mxu3 %v1289_v28 }
 0x167   : > { %v723_v38 = vadd.f32 %v722_v36, %v1914_v52  ;;  %1048 = vmatmul.f32.gmra.mxu3 %v858_v32  ;;  %1178 = vmatmul.f32.gmra.mxu1 %v858_v32  ;;  %v1272_v36 = vld [vmem:[#allocation2 + $0x4e0] sm:$0xff] }
 0x168   : > { %v825_v39 = vmul.f32 0.01, %v655_v35  ;;  %1320 = vmatpush.msra.mxu2 %v1272_v36 }
 0x169   : > { %v788_v40 = vadd.f32 %v787_v37, %v723_v38  ;;  %v1288_v37 = vld [vmem:[#allocation2 + $0x5e0] sm:$0xff] }
 0x16a   : > { %v857_v41 = vmax.f32 %v655_v35, %v825_v39  ;;  %1385 = vmatpush.msra.mxu3 %v1288_v37 }
 0x16b   : > { %v828_v42 = vmul.f32 0.01, %v788_v40  ;;  %v592_v43 = vpop.f32.mrf.mxu2  ;;  %v657_v44 = vpop.f32.mrf.mxu3 }
 0x16c   : > { %v593_v45 = vadd.f32 %v592_v43, %v1917_v54  ;;  %983 = vmatmul.f32.gmra.mxu2 %v857_v41  ;;  %1113 = vmatmul.f32.gmra.mxu0 %v857_v41 }
 0x16d   : > { %v860_v46 = vmax.f32 %v788_v40, %v828_v42  ;;  %v1271_v42 = vld [vmem:[#allocation2 + $0x4d0] sm:$0xff] }
 0x16e   : > { %v658_v51 = vadd.f32 %v657_v44, %v593_v45  ;;  %v725_v47 = vpop.f32.mrf.mxu0  ;;  %v790_v48 = vpop.f32.mrf.mxu1  ;;  %1321 = vmatpush.msra.mxu2 %v1271_v42 }
 0x16f   : > { %v726_v53 = vadd.f32 %v725_v47, %v1914_v52  ;;  %1051 = vmatmul.f32.gmra.mxu3 %v860_v46  ;;  %1181 = vmatmul.f32.gmra.mxu1 %v860_v46 }
 0x170   : > { %v827_v55 = vmul.f32 0.01, %v658_v51 }
 0x171   : > { %v791_v56 = vadd.f32 %v790_v48, %v726_v53 }
 0x172   : > { %v859_v57 = vmax.f32 %v658_v51, %v827_v55 }
 0x173   : > { %v830_v58 = vmul.f32 0.01, %v791_v56  ;;  %v595_v59 = vpop.f32.mrf.mxu2  ;;  %v660_v60 = vpop.f32.mrf.mxu3 }
 0x174   : > { %v596_v61 = vadd.f32 %v595_v59, %v1917_v54  ;;  %986 = vmatmul.f32.gmra.mxu2 %v859_v57  ;;  %1116 = vmatmul.f32.gmra.mxu0 %v859_v57 }
 0x175   : > { %v862_v62 = vmax.f32 %v791_v56, %v830_v58 }
 0x176   : > { %v661_v1 = vadd.f32 %v660_v60, %v596_v61  ;;  %v728_v2 = vpop.f32.mrf.mxu0  ;;  %v793_v3 = vpop.f32.mrf.mxu1 }
 0x177   : > { %v729_v4 = vadd.f32 %v728_v2, %v1914_v52  ;;  %1054 = vmatmul.f32.gmra.mxu3 %v862_v62  ;;  %1184 = vmatmul.f32.gmra.mxu1 %v862_v62  ;;  %v1287_v62 = vld [vmem:[#allocation2 + $0x5d0] sm:$0xff] }
 0x178   : > { %v829_v5 = vmul.f32 0.01, %v661_v1  ;;  %1386 = vmatpush.msra.mxu3 %v1287_v62 }
 0x179   : > { %v794_v6 = vadd.f32 %v793_v3, %v729_v4 }
 0x17a   : > { %v861_v7 = vmax.f32 %v661_v1, %v829_v5  ;;  %v1286_v1 = vld [vmem:[#allocation2 + $0x5c0] sm:$0xff] }
 0x17b   : > { %v832_v8 = vmul.f32 0.01, %v794_v6  ;;  %v598_v9 = vpop.f32.mrf.mxu2  ;;  %v663_v10 = vpop.f32.mrf.mxu3  ;;  %1387 = vmatpush.msra.mxu3 %v1286_v1 }
 0x17c   : > { %v599_v11 = vadd.f32 %v598_v9, %v1917_v54  ;;  %989 = vmatmul.f32.gmra.mxu2 %v861_v7  ;;  %1119 = vmatmul.f32.gmra.mxu0 %v861_v7 }
 0x17d   : > { %v864_v12 = vmax.f32 %v794_v6, %v832_v8 }
 0x17e   : > { %v664_v15 = vadd.f32 %v663_v10, %v599_v11  ;;  %v731_v16 = vpop.f32.mrf.mxu0  ;;  %v796_v17 = vpop.f32.mrf.mxu1  ;;  %v1270_v10 = vld [vmem:[#allocation2 + $0x4c0] sm:$0xff] }
 0x17f   : > { %v732_v18 = vadd.f32 %v731_v16, %v1914_v52  ;;  %1057 = vmatmul.f32.gmra.mxu3 %v864_v12  ;;  %1187 = vmatmul.f32.gmra.mxu1 %v864_v12 }
 0x180   : > { %v831_v19 = vmul.f32 0.01, %v664_v15  ;;  %1322 = vmatpush.msra.mxu2 %v1270_v10 }
 0x181   : > { %v797_v20 = vadd.f32 %v796_v17, %v732_v18 }
 0x182   : > { %v863_v21 = vmax.f32 %v664_v15, %v831_v19 }
 0x183   : > { %v834_v22 = vmul.f32 0.01, %v797_v20  ;;  %v601_v23 = vpop.f32.mrf.mxu2  ;;  %v666_v24 = vpop.f32.mrf.mxu3 }
 0x184   : > { %v602_v25 = vadd.f32 %v601_v23, %v1917_v54  ;;  %992 = vmatmul.f32.gmra.mxu2 %v863_v21  ;;  %1122 = vmatmul.f32.gmra.mxu0 %v863_v21  ;;  %v1681_v23 = vld [vmem:[%s2121_s2 + $0x2] ss:$4 sm:$0x3] }
 0x185   : > { %v866_v26 = vmax.f32 %v797_v20, %v834_v22 }
 0x186   : > { %v667_v29 = vadd.f32 %v666_v24, %v602_v25  ;;  %v734_v30 = vpop.f32.mrf.mxu0  ;;  %v799_v31 = vpop.f32.mrf.mxu1  ;;  %v1953_v25 = vperm.slane %v1681_v23, 1 }
 0x187   : > { %v735_v32 = vadd.f32 %v734_v30, %v1914_v52  ;;  %1060 = vmatmul.f32.gmra.mxu3 %v866_v26  ;;  %1190 = vmatmul.f32.gmra.mxu1 %v866_v26  ;;  %v1956_v30 = vperm.slane %v1681_v23, 0 }
 0x188   : > { %v833_v33 = vmul.f32 0.01, %v667_v29 }
 0x189   : > { %v800_v34 = vadd.f32 %v799_v31, %v735_v32 }
 0x18a   : > { %v865_v35 = vmax.f32 %v667_v29, %v833_v33 }
 0x18b   : > { %v836_v38 = vmul.f32 0.01, %v800_v34  ;;  %v604_v39 = vpop.f32.mrf.mxu2  ;;  %v669_v40 = vpop.f32.mrf.mxu3 }
 0x18c   : > { %v605_v41 = vadd.f32 %v604_v39, %v1917_v54  ;;  %995 = vmatmul.f32.gmra.mxu2 %v865_v35  ;;  %1125 = vmatmul.f32.gmra.mxu0 %v865_v35 }
 0x18d   : > { %v868_v43 = vmax.f32 %v800_v34, %v836_v38 }
 0x18e   : > { %v670_v44 = vadd.f32 %v669_v40, %v605_v41  ;;  %v737_v45 = vpop.f32.mrf.mxu0  ;;  %v802_v46 = vpop.f32.mrf.mxu1 }
 0x18f   : > { %v738_v49 = vadd.f32 %v737_v45, %v1914_v52  ;;  %1063 = vmatmul.f32.gmra.mxu3 %v868_v43  ;;  %1193 = vmatmul.f32.gmra.mxu1 %v868_v43 }
 0x190   : > { %v835_v50 = vmul.f32 0.01, %v670_v44 }
 0x191   : > { %v803_v51 = vadd.f32 %v802_v46, %v738_v49 }
 0x192   : > { %v867_v47 = vmax.f32 %v670_v44, %v835_v50 }
 0x193   : > { %v838_v48 = vmul.f32 0.01, %v803_v51  ;;  %v607_v53 = vpop.f32.mrf.mxu2  ;;  %v672_v55 = vpop.f32.mrf.mxu3 }
 0x194   : > { %v608_v56 = vadd.f32 %v607_v53, %v1917_v54  ;;  %998 = vmatmul.f32.gmra.mxu2 %v867_v47  ;;  %1128 = vmatmul.f32.gmra.mxu0 %v867_v47 }
 0x195   : > { %v870_v57 = vmax.f32 %v803_v51, %v838_v48 }
 0x196   : > { %v673_v58 = vadd.f32 %v672_v55, %v608_v56  ;;  %v740_v59 = vpop.f32.mrf.mxu0  ;;  %v805_v60 = vpop.f32.mrf.mxu1 }
 0x197   : > { %v741_v61 = vadd.f32 %v740_v59, %v1914_v52  ;;  %1066 = vmatmul.f32.gmra.mxu3 %v870_v57  ;;  %1196 = vmatmul.f32.gmra.mxu1 %v870_v57 }
 0x198   : > { %v837_v63 = vmul.f32 0.01, %v673_v58 }
 0x199   : > { %v806_v0 = vadd.f32 %v805_v60, %v741_v61 }
 0x19a   : > { %v869_v2 = vmax.f32 %v673_v58, %v837_v63 }
 0x19b   : > { %v840_v3 = vmul.f32 0.01, %v806_v0  ;;  %v610_v4 = vpop.f32.mrf.mxu2  ;;  %v675_v5 = vpop.f32.mrf.mxu3 }
 0x19c   : > { %v611_v6 = vadd.f32 %v610_v4, %v1917_v54  ;;  %1001 = vmatmul.f32.gmra.mxu2 %v869_v2  ;;  %1131 = vmatmul.f32.gmra.mxu0 %v869_v2 }
 0x19d   : > { %v872_v7 = vmax.f32 %v806_v0, %v840_v3 }
 0x19e   : > { %v676_v8 = vadd.f32 %v675_v5, %v611_v6  ;;  %v743_v9 = vpop.f32.mrf.mxu0  ;;  %v808_v13 = vpop.f32.mrf.mxu1 }
 0x19f   : > { %v744_v11 = vadd.f32 %v743_v9, %v1914_v52  ;;  %1069 = vmatmul.f32.gmra.mxu3 %v872_v7  ;;  %1199 = vmatmul.f32.gmra.mxu1 %v872_v7 }
 0x1a0   : > { %v839_v12 = vmul.f32 0.01, %v676_v8 }
 0x1a1   : > { %v809_v14 = vadd.f32 %v808_v13, %v744_v11 }
 0x1a2   : > { %v871_v15 = vmax.f32 %v676_v8, %v839_v12 }
 0x1a3   : > { %v842_v16 = vmul.f32 0.01, %v809_v14  ;;  %v613_v17 = vpop.f32.mrf.mxu2  ;;  %v678_v20 = vpop.f32.mrf.mxu3 }
 0x1a4   : > { %v614_v18 = vadd.f32 %v613_v17, %v1917_v54  ;;  %1004 = vmatmul.f32.gmra.mxu2 %v871_v15  ;;  %1134 = vmatmul.f32.gmra.mxu0 %v871_v15 }
 0x1a5   : > { %v874_v19 = vmax.f32 %v809_v14, %v842_v16 }
 0x1a6   : > { %v679_v21 = vadd.f32 %v678_v20, %v614_v18 }
 0x1a7   : > { %1072 = vmatmul.f32.gmra.mxu3 %v874_v19  ;;  %1202 = vmatmul.f32.gmra.mxu1 %v874_v19 }
 0x1a8   : > { %v841_v22 = vmul.f32 0.01, %v679_v21 }
 0x1aa   : > { %v873_v52 = vmax.f32 %v679_v21, %v841_v22 }
 0x1ac   : > { %v1158_v24 = vpop.f32.mrf.mxu1  ;;  %1007 = vmatmul.f32.gmra.mxu2 %v873_v52  ;;  %1137 = vmatmul.f32.gmra.mxu0 %v873_v52 }
 0x1b1   : > { %v1093_v26 = vpop.f32.mrf.mxu0 }
 0x1b2   : > { %v1028_v54 = vpop.f32.mrf.mxu3  ;;  %v1094_v27 = vadd.f32 %v1093_v26, %v1953_v25 }
 0x1b4   : > { %v1159_v28 = vadd.f32 %v1158_v24, %v1094_v27  ;;  %v1161_v29 = vpop.f32.mrf.mxu1 }
 0x1b6   : > { %v1207_v31 = vmul.f32 0.01, %v1159_v28 }
 0x1b7   : > { %v963_v32 = vpop.f32.mrf.mxu2 }
 0x1b8   : > { %v1239_v33 = vmax.f32 %v1159_v28, %v1207_v31  ;;  %v964_v34 = vadd.f32 %v963_v32, %v1956_v30 }
 0x1b9   : > { %v1096_v35 = vpop.f32.mrf.mxu0 }
 0x1ba   : > { %v1029_v36 = vadd.f32 %v1028_v54, %v964_v34  ;;  %v1031_v37 = vpop.f32.mrf.mxu3  ;;  %v1097_v38 = vadd.f32 %v1096_v35, %v1953_v25  ;;  %1388 = vmatmul.f32.vlgmr.msra.gmra.mxu3 %v1239_v33 }
 0x1bc   : > { %v1206_v39 = vmul.f32 0.01, %v1029_v36  ;;  %v1162_v40 = vadd.f32 %v1161_v29, %v1097_v38  ;;  %v1164_v41 = vpop.f32.mrf.mxu1 }
 0x1be   : > { %v1238_v42 = vmax.f32 %v1029_v36, %v1206_v39  ;;  %v1209_v43 = vmul.f32 0.01, %v1162_v40 }
 0x1bf   : > { %v966_v44 = vpop.f32.mrf.mxu2 }
 0x1c0   : > { %v967_v45 = vadd.f32 %v966_v44, %v1956_v30  ;;  %1323 = vmatmul.f32.vlgmr.msra.gmra.mxu2 %v1238_v42  ;;  %v1241_v46 = vmax.f32 %v1162_v40, %v1209_v43 }
 0x1c1   : > { %v1099_v49 = vpop.f32.mrf.mxu0 }
 0x1c2   : > { %v1032_v50 = vadd.f32 %v1031_v37, %v967_v45  ;;  %v1034_v51 = vpop.f32.mrf.mxu3  ;;  %v1100_v47 = vadd.f32 %v1099_v49, %v1953_v25  ;;  %1391 = vmatmul.f32.gmra.mxu3 %v1241_v46 }
 0x1c4   : > { %v1208_v48 = vmul.f32 0.01, %v1032_v50  ;;  %v1165_v53 = vadd.f32 %v1164_v41, %v1100_v47  ;;  %v1167_v55 = vpop.f32.mrf.mxu1 }
 0x1c6   : > { %v1211_v56 = vmul.f32 0.01, %v1165_v53  ;;  %v1240_v57 = vmax.f32 %v1032_v50, %v1208_v48 }
 0x1c7   : > { %v969_v58 = vpop.f32.mrf.mxu2 }
 0x1c8   : > { %v970_v59 = vadd.f32 %v969_v58, %v1956_v30  ;;  %1326 = vmatmul.f32.gmra.mxu2 %v1240_v57  ;;  %v1243_v60 = vmax.f32 %v1165_v53, %v1211_v56 }
 0x1c9   : > { %v1102_v61 = vpop.f32.mrf.mxu0 }
 0x1ca   : > { %v1035_v62 = vadd.f32 %v1034_v51, %v970_v59  ;;  %v1037_v63 = vpop.f32.mrf.mxu3  ;;  %v1103_v0 = vadd.f32 %v1102_v61, %v1953_v25  ;;  %1394 = vmatmul.f32.gmra.mxu3 %v1243_v60 }
 0x1cc   : > { %v1210_v1 = vmul.f32 0.01, %v1035_v62  ;;  %v1168_v2 = vadd.f32 %v1167_v55, %v1103_v0  ;;  %v1170_v3 = vpop.f32.mrf.mxu1 }
 0x1ce   : > { %v1213_v4 = vmul.f32 0.01, %v1168_v2  ;;  %v1242_v5 = vmax.f32 %v1035_v62, %v1210_v1 }
 0x1cf   : > { %v972_v6 = vpop.f32.mrf.mxu2 }
 0x1d0   : > { %v973_v7 = vadd.f32 %v972_v6, %v1956_v30  ;;  %1329 = vmatmul.f32.gmra.mxu2 %v1242_v5  ;;  %v1245_v8 = vmax.f32 %v1168_v2, %v1213_v4 }
 0x1d1   : > { %v1105_v9 = vpop.f32.mrf.mxu0 }
 0x1d2   : > { %v1038_v10 = vadd.f32 %v1037_v63, %v973_v7  ;;  %v1040_v11 = vpop.f32.mrf.mxu3  ;;  %v1106_v12 = vadd.f32 %v1105_v9, %v1953_v25  ;;  %1397 = vmatmul.f32.gmra.mxu3 %v1245_v8 }
 0x1d4   : > { %v1212_v13 = vmul.f32 0.01, %v1038_v10  ;;  %v1171_v14 = vadd.f32 %v1170_v3, %v1106_v12  ;;  %v1173_v15 = vpop.f32.mrf.mxu1 }
 0x1d6   : > { %v1215_v16 = vmul.f32 0.01, %v1171_v14  ;;  %v1244_v17 = vmax.f32 %v1038_v10, %v1212_v13 }
 0x1d7   : > { %v975_v18 = vpop.f32.mrf.mxu2 }
 0x1d8   : > { %v976_v19 = vadd.f32 %v975_v18, %v1956_v30  ;;  %1332 = vmatmul.f32.gmra.mxu2 %v1244_v17  ;;  %v1247_v20 = vmax.f32 %v1171_v14, %v1215_v16 }
 0x1d9   : > { %v1108_v21 = vpop.f32.mrf.mxu0 }
 0x1da   : > { %v1041_v22 = vadd.f32 %v1040_v11, %v976_v19  ;;  %v1043_v52 = vpop.f32.mrf.mxu3  ;;  %v1109_v23 = vadd.f32 %v1108_v21, %v1953_v25  ;;  %1400 = vmatmul.f32.gmra.mxu3 %v1247_v20 }
 0x1dc   : > { %v1214_v24 = vmul.f32 0.01, %v1041_v22  ;;  %v1174_v26 = vadd.f32 %v1173_v15, %v1109_v23  ;;  %v1176_v54 = vpop.f32.mrf.mxu1 }
 0x1de   : > { %v1217_v27 = vmul.f32 0.01, %v1174_v26  ;;  %v1246_v28 = vmax.f32 %v1041_v22, %v1214_v24 }
 0x1df   : > { %v978_v29 = vpop.f32.mrf.mxu2 }
 0x1e0   : > { %v979_v31 = vadd.f32 %v978_v29, %v1956_v30  ;;  %1335 = vmatmul.f32.gmra.mxu2 %v1246_v28  ;;  %v1249_v32 = vmax.f32 %v1174_v26, %v1217_v27 }
 0x1e1   : > { %v1111_v33 = vpop.f32.mrf.mxu0 }
 0x1e2   : > { %v1044_v34 = vadd.f32 %v1043_v52, %v979_v31  ;;  %v1046_v35 = vpop.f32.mrf.mxu3  ;;  %v1112_v36 = vadd.f32 %v1111_v33, %v1953_v25  ;;  %1403 = vmatmul.f32.gmra.mxu3 %v1249_v32 }
 0x1e4   : > { %v1216_v37 = vmul.f32 0.01, %v1044_v34  ;;  %v1177_v38 = vadd.f32 %v1176_v54, %v1112_v36  ;;  %v1179_v39 = vpop.f32.mrf.mxu1 }
 0x1e6   : > { %v1219_v40 = vmul.f32 0.01, %v1177_v38  ;;  %v1248_v41 = vmax.f32 %v1044_v34, %v1216_v37 }
 0x1e7   : > { %v981_v42 = vpop.f32.mrf.mxu2 }
 0x1e8   : > { %v982_v43 = vadd.f32 %v981_v42, %v1956_v30  ;;  %1338 = vmatmul.f32.gmra.mxu2 %v1248_v41  ;;  %v1251_v44 = vmax.f32 %v1177_v38, %v1219_v40 }
 0x1e9   : > { %v1114_v45 = vpop.f32.mrf.mxu0 }
 0x1ea   : > { %v1047_v46 = vadd.f32 %v1046_v35, %v982_v43  ;;  %v1049_v49 = vpop.f32.mrf.mxu3  ;;  %v1115_v50 = vadd.f32 %v1114_v45, %v1953_v25  ;;  %1406 = vmatmul.f32.gmra.mxu3 %v1251_v44 }
 0x1ec   : > { %v1218_v51 = vmul.f32 0.01, %v1047_v46  ;;  %v1180_v47 = vadd.f32 %v1179_v39, %v1115_v50  ;;  %v1182_v48 = vpop.f32.mrf.mxu1 }
 0x1ee   : > { %v1221_v53 = vmul.f32 0.01, %v1180_v47  ;;  %v1250_v55 = vmax.f32 %v1047_v46, %v1218_v51 }
 0x1ef   : > { %v984_v56 = vpop.f32.mrf.mxu2 }
 0x1f0   : > { %v985_v57 = vadd.f32 %v984_v56, %v1956_v30  ;;  %1341 = vmatmul.f32.gmra.mxu2 %v1250_v55  ;;  %v1253_v58 = vmax.f32 %v1180_v47, %v1221_v53 }
 0x1f1   : > { %v1117_v59 = vpop.f32.mrf.mxu0 }
 0x1f2   : > { %v1050_v60 = vadd.f32 %v1049_v49, %v985_v57  ;;  %v1052_v61 = vpop.f32.mrf.mxu3  ;;  %v1118_v62 = vadd.f32 %v1117_v59, %v1953_v25  ;;  %1409 = vmatmul.f32.gmra.mxu3 %v1253_v58 }
 0x1f4   : > { %v1220_v63 = vmul.f32 0.01, %v1050_v60  ;;  %v1183_v0 = vadd.f32 %v1182_v48, %v1118_v62  ;;  %v1185_v1 = vpop.f32.mrf.mxu1 }
 0x1f6   : > { %v1223_v2 = vmul.f32 0.01, %v1183_v0  ;;  %v1252_v3 = vmax.f32 %v1050_v60, %v1220_v63 }
 0x1f7   : > { %v987_v4 = vpop.f32.mrf.mxu2 }
 0x1f8   : > { %v988_v5 = vadd.f32 %v987_v4, %v1956_v30  ;;  %1344 = vmatmul.f32.gmra.mxu2 %v1252_v3  ;;  %v1255_v6 = vmax.f32 %v1183_v0, %v1223_v2 }
 0x1f9   : > { %v1120_v7 = vpop.f32.mrf.mxu0 }
 0x1fa   : > { %v1053_v8 = vadd.f32 %v1052_v61, %v988_v5  ;;  %v1055_v9 = vpop.f32.mrf.mxu3  ;;  %v1121_v10 = vadd.f32 %v1120_v7, %v1953_v25  ;;  %1412 = vmatmul.f32.gmra.mxu3 %v1255_v6 }
 0x1fc   : > { %v1222_v11 = vmul.f32 0.01, %v1053_v8  ;;  %v1186_v12 = vadd.f32 %v1185_v1, %v1121_v10  ;;  %v1188_v13 = vpop.f32.mrf.mxu1 }
 0x1fe   : > { %v1225_v14 = vmul.f32 0.01, %v1186_v12  ;;  %v1254_v15 = vmax.f32 %v1053_v8, %v1222_v11 }
 0x1ff   : > { %v990_v16 = vpop.f32.mrf.mxu2 }
 0x200   : > { %v991_v17 = vadd.f32 %v990_v16, %v1956_v30  ;;  %1347 = vmatmul.f32.gmra.mxu2 %v1254_v15  ;;  %v1257_v18 = vmax.f32 %v1186_v12, %v1225_v14 }
 0x201   : > { %v1123_v19 = vpop.f32.mrf.mxu0 }
 0x202   : > { %v1056_v20 = vadd.f32 %v1055_v9, %v991_v17  ;;  %v1058_v21 = vpop.f32.mrf.mxu3  ;;  %v1124_v22 = vadd.f32 %v1123_v19, %v1953_v25  ;;  %1415 = vmatmul.f32.gmra.mxu3 %v1257_v18 }
 0x204   : > { %v1224_v52 = vmul.f32 0.01, %v1056_v20  ;;  %v1189_v23 = vadd.f32 %v1188_v13, %v1124_v22  ;;  %v1191_v24 = vpop.f32.mrf.mxu1 }
 0x206   : > { %v1227_v26 = vmul.f32 0.01, %v1189_v23  ;;  %v1256_v54 = vmax.f32 %v1056_v20, %v1224_v52 }
 0x207   : > { %v993_v27 = vpop.f32.mrf.mxu2 }
 0x208   : > { %v994_v28 = vadd.f32 %v993_v27, %v1956_v30  ;;  %1350 = vmatmul.f32.gmra.mxu2 %v1256_v54  ;;  %v1259_v29 = vmax.f32 %v1189_v23, %v1227_v26 }
 0x209   : > { %v1126_v31 = vpop.f32.mrf.mxu0 }
 0x20a   : > { %v1059_v32 = vadd.f32 %v1058_v21, %v994_v28  ;;  %v1061_v33 = vpop.f32.mrf.mxu3  ;;  %v1127_v34 = vadd.f32 %v1126_v31, %v1953_v25  ;;  %1418 = vmatmul.f32.gmra.mxu3 %v1259_v29 }
 0x20c   : > { %v1226_v35 = vmul.f32 0.01, %v1059_v32  ;;  %v1192_v36 = vadd.f32 %v1191_v24, %v1127_v34  ;;  %v1194_v37 = vpop.f32.mrf.mxu1 }
 0x20e   : > { %v1229_v38 = vmul.f32 0.01, %v1192_v36  ;;  %v1258_v39 = vmax.f32 %v1059_v32, %v1226_v35  ;;  %v1437_v32 = vlaneseq }
 0x20f   : > { %v996_v40 = vpop.f32.mrf.mxu2 }
 0x210   : > { %v997_v41 = vadd.f32 %v996_v40, %v1956_v30  ;;  %1353 = vmatmul.f32.gmra.mxu2 %v1258_v39  ;;  %v1261_v42 = vmax.f32 %v1192_v36, %v1229_v38  ;;  %v1994_v35 = vand.u32 127, %v1437_v32 }
 0x211   : > { %v1129_v43 = vpop.f32.mrf.mxu0 }
 0x212   : > { %v1062_v44 = vadd.f32 %v1061_v33, %v997_v41  ;;  %v1130_v45 = vadd.f32 %v1129_v43, %v1953_v25  ;;  %1421 = vmatmul.f32.gmra.mxu3 %v1261_v42  ;;  %v1064_v46 = vpop.f32.mrf.mxu3  ;;  %vm1439_vm1 = vcmp.eq.s32.totalorder %v1994_v35, 0 }
 0x214   : > { %v1228_v49 = vmul.f32 0.01, %v1062_v44  ;;  %v1195_v50 = vadd.f32 %v1194_v37, %v1130_v45  ;;  %v1197_v48 = vpop.f32.mrf.mxu1 }
 0x216   : > { %v1231_v51 = vmul.f32 0.01, %v1195_v50  ;;  %v1260_v47 = vmax.f32 %v1062_v44, %v1228_v49 }
 0x217   : > { %v999_v53 = vpop.f32.mrf.mxu2 }
 0x218   : > { %v1000_v55 = vadd.f32 %v999_v53, %v1956_v30  ;;  %1356 = vmatmul.f32.gmra.mxu2 %v1260_v47  ;;  %v1263_v56 = vmax.f32 %v1195_v50, %v1231_v51 }
 0x219   : > { %v1132_v57 = vpop.f32.mrf.mxu0 }
 0x21a   : > { %v1065_v58 = vadd.f32 %v1064_v46, %v1000_v55  ;;  %v1133_v59 = vadd.f32 %v1132_v57, %v1953_v25  ;;  %1424 = vmatmul.f32.gmra.mxu3 %v1263_v56  ;;  %v1067_v62 = vpop.f32.mrf.mxu3 }
 0x21c   : > { %v1230_v60 = vmul.f32 0.01, %v1065_v58  ;;  %v1198_v61 = vadd.f32 %v1197_v48, %v1133_v59  ;;  %v1200_v4 = vpop.f32.mrf.mxu1 }
 0x21e   : > { %v1233_v63 = vmul.f32 0.01, %v1198_v61  ;;  %v1262_v0 = vmax.f32 %v1065_v58, %v1230_v60 }
 0x21f   : > { %v1002_v1 = vpop.f32.mrf.mxu2 }
 0x220   : > { %v1003_v2 = vadd.f32 %v1002_v1, %v1956_v30  ;;  %1359 = vmatmul.f32.gmra.mxu2 %v1262_v0  ;;  %v1265_v3 = vmax.f32 %v1198_v61, %v1233_v63 }
 0x221   : > { %v1135_v5 = vpop.f32.mrf.mxu0 }
 0x222   : > { %v1068_v6 = vadd.f32 %v1067_v62, %v1003_v2  ;;  %v1136_v7 = vadd.f32 %v1135_v5, %v1953_v25  ;;  %1427 = vmatmul.f32.gmra.mxu3 %v1265_v3  ;;  %v1070_v12 = vpop.f32.mrf.mxu3 }
 0x224   : > { %v1232_v8 = vmul.f32 0.01, %v1068_v6  ;;  %v1201_v9 = vadd.f32 %v1200_v4, %v1136_v7  ;;  %v1203_v19 = vpop.f32.mrf.mxu1 }
 0x226   : > { %v1235_v10 = vmul.f32 0.01, %v1201_v9  ;;  %v1264_v11 = vmax.f32 %v1068_v6, %v1232_v8 }
 0x227   : > { %v1005_v13 = vpop.f32.mrf.mxu2 }
 0x228   : > { %v1006_v14 = vadd.f32 %v1005_v13, %v1956_v30  ;;  %1362 = vmatmul.f32.gmra.mxu2 %v1264_v11  ;;  %v1267_v15 = vmax.f32 %v1201_v9, %v1235_v10 }
 0x229   : > { %v1138_v16 = vpop.f32.mrf.mxu0 }
 0x22a   : > { %v1071_v17 = vadd.f32 %v1070_v12, %v1006_v14  ;;  %v1139_v18 = vadd.f32 %v1138_v16, %v1953_v25  ;;  %1430 = vmatmul.f32.gmra.mxu3 %v1267_v15  ;;  %v1073_v54 = vpop.f32.mrf.mxu3  ;;  %v1682_v25 = vld [vmem:[%s2121_s2 + $0x3] ss:$4 sm:$0x3] }
 0x22b   : > { %v1992_v33 = vperm.slane %v1682_v25, 0 }
 0x22c   : > { %v1234_v20 = vmul.f32 0.01, %v1071_v17  ;;  %v1204_v21 = vadd.f32 %v1203_v19, %v1139_v18 }
 0x22e   : > { %v1237_v22 = vmul.f32 0.01, %v1204_v21  ;;  %v1266_v52 = vmax.f32 %v1071_v17, %v1234_v20 }
 0x22f   : > { %v1008_v23 = vpop.f32.mrf.mxu2 }
 0x230   : > { %v1009_v24 = vadd.f32 %v1008_v23, %v1956_v30  ;;  %1365 = vmatmul.f32.gmra.mxu2 %v1266_v52  ;;  %v1269_v26 = vmax.f32 %v1204_v21, %v1237_v22 }
 0x232   : > { %v1074_v27 = vadd.f32 %v1073_v54, %v1009_v24  ;;  %1433 = vmatmul.f32.gmra.mxu3 %v1269_v26 }
 0x234   : > { %v1236_v28 = vmul.f32 0.01, %v1074_v27 }
 0x236   : > { %v1268_v29 = vmax.f32 %v1074_v27, %v1236_v28 }
 0x238   : > { %1368 = vmatmul.f32.gmra.mxu2 %v1268_v29 }
 0x23d   : > { %v1389_v31 = vpop.f32.mrf.mxu3 }
 0x243   : > { %v1324_v34 = vpop.f32.mrf.mxu2 }
 0x244   : > { %v1325_v30 = vadd.f32 %v1324_v34, %v1992_v33 }
 0x245   : > { %v1392_v36 = vpop.f32.mrf.mxu3 }
 0x246   : > { %v1390_v37 = vadd.f32 %v1389_v31, %v1325_v30 }
 0x248   : > { %v1440_v38 = vmul.f32 0.5, %v1390_v37 }
 0x24a   : > { %v1456_v39 = vsel %vm1439_vm1, %v1390_v37, %v1440_v38 }
 0x24b   : > { %1706 = vtanh.f32 %v1456_v39  ;;  %v1327_v40 = vpop.f32.mrf.mxu2 }
 0x24c   : > { %v1328_v41 = vadd.f32 %v1327_v40, %v1992_v33 }
 0x24d   : > { %v1395_v42 = vpop.f32.mrf.mxu3 }
 0x24e   : > { %v1393_v43 = vadd.f32 %v1392_v36, %v1328_v41 }
 0x250   : > { %v1441_v44 = vmul.f32 0.5, %v1393_v43 }
 0x251   : > { %v1707_v45 = vpop.eup %1706 }
 0x252   : > { %v1488_v46 = vadd.f32 1.0, %v1707_v45  ;;  %v1457_v49 = vsel %vm1439_vm1, %v1393_v43, %v1441_v44 }
 0x253   : > { %1708 = vtanh.f32 %v1457_v49  ;;  %v1330_v50 = vpop.f32.mrf.mxu2 }
 0x254   : > { %v1504_v51 = vmul.f32 0.5, %v1488_v46  ;;  %v1331_v47 = vadd.f32 %v1330_v50, %v1992_v33 }
 0x255   : > { %v1398_v48 = vpop.f32.mrf.mxu3 }
 0x256   : > { %v1520_v53 = vsel %vm1439_vm1, %v1707_v45, %v1504_v51  ;;  %v1396_v55 = vadd.f32 %v1395_v42, %v1331_v47 }
 0x257   : > { %v1536_v56 = vmul.f32 100.0, %v1520_v53 }
 0x258   : > { %v1442_v57 = vmul.f32 0.5, %v1396_v55 }
 0x259   : > { %v1709_v58 = vpop.eup %1708  ;;  %1553 = vst.msk [vmem:[%s2009_s9] sm:$0xff] %vm1552_vm2, %v1536_v56 }
 0x25a   : > { %v1489_v59 = vadd.f32 1.0, %v1709_v58  ;;  %v1458_v60 = vsel %vm1439_vm1, %v1396_v55, %v1442_v57 }
 0x25b   : > { %1710 = vtanh.f32 %v1458_v60  ;;  %v1333_v61 = vpop.f32.mrf.mxu2 }
 0x25c   : > { %v1505_v62 = vmul.f32 0.5, %v1489_v59  ;;  %v1334_v63 = vadd.f32 %v1333_v61, %v1992_v33 }
 0x25d   : > { %v1401_v0 = vpop.f32.mrf.mxu3 }
 0x25e   : > { %v1521_v1 = vsel %vm1439_vm1, %v1709_v58, %v1505_v62  ;;  %v1399_v2 = vadd.f32 %v1398_v48, %v1334_v63 }
 0x25f   : > { %v1537_v3 = vmul.f32 100.0, %v1521_v1 }
 0x260   : > { %v1443_v4 = vmul.f32 0.5, %v1399_v2 }
 0x261   : > { %v1711_v5 = vpop.eup %1710  ;;  %1554 = vst.msk [vmem:[%s2009_s9 + $0x8] sm:$0xff] %vm1552_vm2, %v1537_v3 }
 0x262   : > { %v1490_v6 = vadd.f32 1.0, %v1711_v5  ;;  %v1459_v7 = vsel %vm1439_vm1, %v1399_v2, %v1443_v4 }
 0x263   : > { %1712 = vtanh.f32 %v1459_v7  ;;  %v1336_v8 = vpop.f32.mrf.mxu2 }
 0x264   : > { %v1506_v9 = vmul.f32 0.5, %v1490_v6  ;;  %v1337_v10 = vadd.f32 %v1336_v8, %v1992_v33 }
 0x265   : > { %v1404_v11 = vpop.f32.mrf.mxu3 }
 0x266   : > { %v1522_v12 = vsel %vm1439_vm1, %v1711_v5, %v1506_v9  ;;  %v1402_v13 = vadd.f32 %v1401_v0, %v1337_v10 }
 0x267   : > { %v1538_v14 = vmul.f32 100.0, %v1522_v12 }
 0x268   : > { %v1444_v15 = vmul.f32 0.5, %v1402_v13 }
 0x269   : > { %v1713_v16 = vpop.eup %1712  ;;  %1555 = vst.msk [vmem:[%s2009_s9 + $0x10] sm:$0xff] %vm1552_vm2, %v1538_v14 }
 0x26a   : > { %v1491_v17 = vadd.f32 1.0, %v1713_v16  ;;  %v1460_v18 = vsel %vm1439_vm1, %v1402_v13, %v1444_v15 }
 0x26b   : > { %1714 = vtanh.f32 %v1460_v18  ;;  %v1339_v19 = vpop.f32.mrf.mxu2 }
 0x26c   : > { %v1507_v20 = vmul.f32 0.5, %v1491_v17  ;;  %v1340_v21 = vadd.f32 %v1339_v19, %v1992_v33 }
 0x26d   : > { %v1407_v22 = vpop.f32.mrf.mxu3 }
 0x26e   : > { %v1523_v52 = vsel %vm1439_vm1, %v1713_v16, %v1507_v20  ;;  %v1405_v23 = vadd.f32 %v1404_v11, %v1340_v21 }
 0x26f   : > { %v1539_v24 = vmul.f32 100.0, %v1523_v52 }
 0x270   : > { %v1445_v26 = vmul.f32 0.5, %v1405_v23 }
 0x271   : > { %v1715_v54 = vpop.eup %1714  ;;  %1556 = vst.msk [vmem:[%s2009_s9 + $0x18] sm:$0xff] %vm1552_vm2, %v1539_v24 }
 0x272   : > { %v1492_v27 = vadd.f32 1.0, %v1715_v54  ;;  %v1461_v28 = vsel %vm1439_vm1, %v1405_v23, %v1445_v26 }
 0x273   : > { %1716 = vtanh.f32 %v1461_v28  ;;  %v1342_v29 = vpop.f32.mrf.mxu2 }
 0x274   : > { %v1508_v31 = vmul.f32 0.5, %v1492_v27  ;;  %v1343_v25 = vadd.f32 %v1342_v29, %v1992_v33 }
 0x275   : > { %v1410_v32 = vpop.f32.mrf.mxu3 }
 0x276   : > { %v1524_v34 = vsel %vm1439_vm1, %v1715_v54, %v1508_v31  ;;  %v1408_v30 = vadd.f32 %v1407_v22, %v1343_v25 }
 0x277   : > { %v1540_v36 = vmul.f32 100.0, %v1524_v34 }
 0x278   : > { %v1446_v37 = vmul.f32 0.5, %v1408_v30 }
 0x279   : > { %v1717_v38 = vpop.eup %1716  ;;  %1557 = vst.msk [vmem:[%s2009_s9 + $0x20] sm:$0xff] %vm1552_vm2, %v1540_v36 }
 0x27a   : > { %v1493_v39 = vadd.f32 1.0, %v1717_v38  ;;  %v1462_v40 = vsel %vm1439_vm1, %v1408_v30, %v1446_v37 }
 0x27b   : > { %1718 = vtanh.f32 %v1462_v40  ;;  %v1345_v41 = vpop.f32.mrf.mxu2 }
 0x27c   : > { %v1509_v42 = vmul.f32 0.5, %v1493_v39  ;;  %v1346_v43 = vadd.f32 %v1345_v41, %v1992_v33 }
 0x27d   : > { %v1413_v44 = vpop.f32.mrf.mxu3 }
 0x27e   : > { %v1525_v45 = vsel %vm1439_vm1, %v1717_v38, %v1509_v42  ;;  %v1411_v46 = vadd.f32 %v1410_v32, %v1346_v43 }
 0x27f   : > { %v1541_v49 = vmul.f32 100.0, %v1525_v45 }
 0x280   : > { %v1447_v50 = vmul.f32 0.5, %v1411_v46 }
 0x281   : > { %v1719_v51 = vpop.eup %1718  ;;  %1558 = vst.msk [vmem:[%s2009_s9 + $0x28] sm:$0xff] %vm1552_vm2, %v1541_v49 }
 0x282   : > { %v1494_v47 = vadd.f32 1.0, %v1719_v51  ;;  %v1463_v48 = vsel %vm1439_vm1, %v1411_v46, %v1447_v50 }
 0x283   : > { %1720 = vtanh.f32 %v1463_v48  ;;  %v1348_v53 = vpop.f32.mrf.mxu2 }
 0x284   : > { %v1510_v55 = vmul.f32 0.5, %v1494_v47  ;;  %v1349_v56 = vadd.f32 %v1348_v53, %v1992_v33 }
 0x285   : > { %v1416_v57 = vpop.f32.mrf.mxu3 }
 0x286   : > { %v1526_v58 = vsel %vm1439_vm1, %v1719_v51, %v1510_v55  ;;  %v1414_v59 = vadd.f32 %v1413_v44, %v1349_v56 }
 0x287   : > { %v1542_v60 = vmul.f32 100.0, %v1526_v58 }
 0x288   : > { %v1448_v61 = vmul.f32 0.5, %v1414_v59 }
 0x289   : > { %v1721_v62 = vpop.eup %1720  ;;  %1559 = vst.msk [vmem:[%s2009_s9 + $0x30] sm:$0xff] %vm1552_vm2, %v1542_v60 }
 0x28a   : > { %v1495_v63 = vadd.f32 1.0, %v1721_v62  ;;  %v1464_v0 = vsel %vm1439_vm1, %v1414_v59, %v1448_v61 }
 0x28b   : > { %1722 = vtanh.f32 %v1464_v0  ;;  %v1351_v1 = vpop.f32.mrf.mxu2 }
 0x28c   : > { %v1511_v2 = vmul.f32 0.5, %v1495_v63  ;;  %v1352_v3 = vadd.f32 %v1351_v1, %v1992_v33 }
 0x28d   : > { %v1419_v4 = vpop.f32.mrf.mxu3 }
 0x28e   : > { %v1527_v5 = vsel %vm1439_vm1, %v1721_v62, %v1511_v2  ;;  %v1417_v6 = vadd.f32 %v1416_v57, %v1352_v3 }
 0x28f   : > { %v1543_v7 = vmul.f32 100.0, %v1527_v5 }
 0x290   : > { %v1449_v8 = vmul.f32 0.5, %v1417_v6 }
 0x291   : > { %v1723_v9 = vpop.eup %1722  ;;  %1560 = vst.msk [vmem:[%s2009_s9 + $0x38] sm:$0xff] %vm1552_vm2, %v1543_v7 }
 0x292   : > { %v1496_v10 = vadd.f32 1.0, %v1723_v9  ;;  %v1465_v11 = vsel %vm1439_vm1, %v1417_v6, %v1449_v8 }
 0x293   : > { %1724 = vtanh.f32 %v1465_v11  ;;  %v1354_v12 = vpop.f32.mrf.mxu2 }
 0x294   : > { %v1512_v13 = vmul.f32 0.5, %v1496_v10  ;;  %v1355_v14 = vadd.f32 %v1354_v12, %v1992_v33 }
 0x295   : > { %v1422_v15 = vpop.f32.mrf.mxu3 }
 0x296   : > { %v1528_v16 = vsel %vm1439_vm1, %v1723_v9, %v1512_v13  ;;  %v1420_v17 = vadd.f32 %v1419_v4, %v1355_v14 }
 0x297   : > { %v1544_v18 = vmul.f32 100.0, %v1528_v16 }
 0x298   : > { %v1450_v19 = vmul.f32 0.5, %v1420_v17 }
 0x299   : > { %v1725_v20 = vpop.eup %1724  ;;  %1561 = vst.msk [vmem:[%s2009_s9 + $0x40] sm:$0xff] %vm1552_vm2, %v1544_v18 }
 0x29a   : > { %v1497_v21 = vadd.f32 1.0, %v1725_v20  ;;  %v1466_v22 = vsel %vm1439_vm1, %v1420_v17, %v1450_v19 }
 0x29b   : > { %1726 = vtanh.f32 %v1466_v22  ;;  %v1357_v52 = vpop.f32.mrf.mxu2 }
 0x29c   : > { %v1513_v23 = vmul.f32 0.5, %v1497_v21  ;;  %v1358_v24 = vadd.f32 %v1357_v52, %v1992_v33 }
 0x29d   : > { %v1425_v28 = vpop.f32.mrf.mxu3 }
 0x29e   : > { %v1529_v26 = vsel %vm1439_vm1, %v1725_v20, %v1513_v23  ;;  %v1423_v54 = vadd.f32 %v1422_v15, %v1358_v24 }
 0x29f   : > { %v1545_v27 = vmul.f32 100.0, %v1529_v26 }
 0x2a0   : > { %v1451_v29 = vmul.f32 0.5, %v1423_v54 }
 0x2a1   : > { %v1727_v31 = vpop.eup %1726  ;;  %1562 = vst.msk [vmem:[%s2009_s9 + $0x48] sm:$0xff] %vm1552_vm2, %v1545_v27 }
 0x2a2   : > { %v1498_v25 = vadd.f32 1.0, %v1727_v31  ;;  %v1467_v32 = vsel %vm1439_vm1, %v1423_v54, %v1451_v29 }
 0x2a3   : > { %1728 = vtanh.f32 %v1467_v32  ;;  %v1360_v34 = vpop.f32.mrf.mxu2 }
 0x2a4   : > { %v1514_v30 = vmul.f32 0.5, %v1498_v25  ;;  %v1361_v36 = vadd.f32 %v1360_v34, %v1992_v33 }
 0x2a5   : > { %v1428_v42 = vpop.f32.mrf.mxu3 }
 0x2a6   : > { %v1530_v37 = vsel %vm1439_vm1, %v1727_v31, %v1514_v30  ;;  %v1426_v38 = vadd.f32 %v1425_v28, %v1361_v36 }
 0x2a7   : > { %v1546_v39 = vmul.f32 100.0, %v1530_v37 }
 0x2a8   : > { %v1452_v40 = vmul.f32 0.5, %v1426_v38 }
 0x2a9   : > { %v1729_v41 = vpop.eup %1728  ;;  %1563 = vst.msk [vmem:[%s2009_s9 + $0x50] sm:$0xff] %vm1552_vm2, %v1546_v39 }
 0x2aa   : > { %v1499_v43 = vadd.f32 1.0, %v1729_v41  ;;  %v1468_v44 = vsel %vm1439_vm1, %v1426_v38, %v1452_v40 }
 0x2ab   : > { %1730 = vtanh.f32 %v1468_v44  ;;  %v1363_v45 = vpop.f32.mrf.mxu2 }
 0x2ac   : > { %v1515_v46 = vmul.f32 0.5, %v1499_v43  ;;  %v1364_v49 = vadd.f32 %v1363_v45, %v1992_v33 }
 0x2ad   : > { %v1431_v57 = vpop.f32.mrf.mxu3 }
 0x2ae   : > { %v1531_v50 = vsel %vm1439_vm1, %v1729_v41, %v1515_v46  ;;  %v1429_v51 = vadd.f32 %v1428_v42, %v1364_v49 }
 0x2af   : > { %v1547_v47 = vmul.f32 100.0, %v1531_v50 }
 0x2b0   : > { %v1453_v48 = vmul.f32 0.5, %v1429_v51 }
 0x2b1   : > { %v1731_v53 = vpop.eup %1730  ;;  %1564 = vst.msk [vmem:[%s2009_s9 + $0x58] sm:$0xff] %vm1552_vm2, %v1547_v47 }
 0x2b2   : > { %v1500_v55 = vadd.f32 1.0, %v1731_v53  ;;  %v1469_v56 = vsel %vm1439_vm1, %v1429_v51, %v1453_v48 }
 0x2b3   : > { %1732 = vtanh.f32 %v1469_v56  ;;  %v1366_v58 = vpop.f32.mrf.mxu2 }
 0x2b4   : > { %v1516_v59 = vmul.f32 0.5, %v1500_v55  ;;  %v1367_v60 = vadd.f32 %v1366_v58, %v1992_v33 }
 0x2b5   : > { %v1434_v7 = vpop.f32.mrf.mxu3 }
 0x2b6   : > { %v1532_v61 = vsel %vm1439_vm1, %v1731_v53, %v1516_v59  ;;  %v1432_v62 = vadd.f32 %v1431_v57, %v1367_v60 }
 0x2b7   : > { %v1548_v63 = vmul.f32 100.0, %v1532_v61 }
 0x2b8   : > { %v1454_v0 = vmul.f32 0.5, %v1432_v62 }
 0x2b9   : > { %v1733_v1 = vpop.eup %1732  ;;  %1565 = vst.msk [vmem:[%s2009_s9 + $0x60] sm:$0xff] %vm1552_vm2, %v1548_v63 }
 0x2ba   : > { %v1501_v2 = vadd.f32 1.0, %v1733_v1  ;;  %v1470_v3 = vsel %vm1439_vm1, %v1432_v62, %v1454_v0 }
 0x2bb   : > { %1734 = vtanh.f32 %v1470_v3  ;;  %v1369_v4 = vpop.f32.mrf.mxu2 }
 0x2bc   : > { %v1517_v5 = vmul.f32 0.5, %v1501_v2  ;;  %v1370_v6 = vadd.f32 %v1369_v4, %v1992_v33 }
 0x2be   : > { %v1533_v8 = vsel %vm1439_vm1, %v1733_v1, %v1517_v5  ;;  %v1435_v9 = vadd.f32 %v1434_v7, %v1370_v6 }
 0x2bf   : > { %v1549_v10 = vmul.f32 100.0, %v1533_v8 }
 0x2c0   : > { %v1455_v11 = vmul.f32 0.5, %v1435_v9 }
 0x2c1   : > { %v1735_v12 = vpop.eup %1734  ;;  %1566 = vst.msk [vmem:[%s2009_s9 + $0x68] sm:$0xff] %vm1552_vm2, %v1549_v10 }
 0x2c2   : > { %v1502_v13 = vadd.f32 1.0, %v1735_v12  ;;  %v1471_v14 = vsel %vm1439_vm1, %v1435_v9, %v1455_v11 }
 0x2c3   : > { %1736 = vtanh.f32 %v1471_v14 }
 0x2c4   : > { %v1518_v15 = vmul.f32 0.5, %v1502_v13 }
 0x2c6   : > { %v1534_v33 = vsel %vm1439_vm1, %v1735_v12, %v1518_v15 }
 0x2c7   : > { %v1550_v16 = vmul.f32 100.0, %v1534_v33 }
 0x2c9   : > { %v1737_v17 = vpop.eup %1736  ;;  %1567 = vst.msk [vmem:[%s2009_s9 + $0x70] sm:$0xff] %vm1552_vm2, %v1550_v16 }
 0x2ca   : > { %v1503_v18 = vadd.f32 1.0, %v1737_v17 }
 0x2cc   : > { %v1519_v19 = vmul.f32 0.5, %v1503_v18 }
 0x2ce   : > { %v1535_v20 = vsel %vm1439_vm1, %v1737_v17, %v1519_v19 }
 0x2cf   : > { %v1551_v21 = vmul.f32 100.0, %v1535_v20 }
 0x2d1   : > { %1568 = vst.msk [vmem:[%s2009_s9 + $0x78] sm:$0xff] %vm1552_vm2, %v1551_v21 }
 0x2d2 PF: > { %s14_s12 = sadd.s32 1, %s1778_s12  }
 0x2d3   : > { %p11_p7 = scmp.ge.s32.totalorder %s14_s12, 4  }
 0x2d5   :  { %13 = sbr.rel (!%p11_p7) target bundleno = 1 (0x1), region = 70 }
 0x2da   :  { %1591 = vsyncpa [#allocation3], 1 }
 0x2db   :  { %1593 = vsyncpa [#allocation3 + $0x1], 1 }

</bundles_post_ra>
